<compile_context>
chip_gen: v6e
topology: v6e:2x2x1
jax: 0.10.0
libtpu: 0.0.40
codegen_flags: <defaults>
</compile_context>

<pallas_src>
import functools
import math

import jax
import jax.numpy as jnp
from jax.experimental import pallas as pl
from jax.experimental.pallas import tpu as pltpu


def _layer_norm(x, gamma, beta, eps=1e-5):
    mu = jnp.mean(x, axis=-1, keepdims=True)
    xc = x - mu
    var = jnp.mean(xc * xc, axis=-1, keepdims=True)
    return xc * jax.lax.rsqrt(var + eps) * gamma + beta


def _attn_block(x_q, k_heads, v_heads, bias, wq, bq, wo_h, bo, *,
                num_heads, d_k, compute_dtype, approx_recip):
    """One attention block against precomputed per-head K/V.

    x_q:               (Tq, D)  f32 query rows
    k_heads / v_heads: (H, Sk, d_k) compute_dtype (persistent VMEM scratch)
    bias:              (Tq, Sk) f32 additive mask (0 / -1e9)
    wo_h:              (H, d_k, D) head-major output projection weight
    """
    tq = x_q.shape[0]
    q = jnp.dot(x_q.astype(compute_dtype), wq,
                preferred_element_type=jnp.float32) + bq                 # (Tq, D)
    qh = jnp.transpose(q.reshape(tq, num_heads, d_k), (1, 0, 2))          # (H, Tq, d_k)
    scores = jnp.einsum('hqd,hkd->hqk', qh.astype(compute_dtype), k_heads,
                        preferred_element_type=jnp.float32)               # (H, Tq, Sk)
    scores = scores * (1.0 / math.sqrt(d_k)) + bias[None, :, :]
    m = jnp.max(scores, axis=-1, keepdims=True)
    e = jnp.exp(scores - m)
    denom = jnp.sum(e, axis=-1, keepdims=True)
    probs = e * pl.reciprocal(denom, approx=approx_recip)
    # NOTE: probs are cast to compute_dtype for the P·V matmul (standard practice);
    # keep them f32 here if tighter parity with the f32 reference is required.
    ctx = jnp.einsum('hqk,hkd->hqd', probs.astype(compute_dtype), v_heads,
                     preferred_element_type=jnp.float32)                  # (H, Tq, d_k)
    # Head-batched output projection (no combine-heads transpose/reshape).
    out_h = jnp.einsum('hqd,hde->hqe', ctx.astype(compute_dtype), wo_h,
                       preferred_element_type=jnp.float32)                # (H, Tq, D)
    return jnp.sum(out_h, axis=0) + bo                                    # (Tq, D)


def decoder_layer_kernel(*refs, num_heads, d_k, compute_dtype, causal_tgt,
                         share_x, approx_recip):
    # scratch refs (trailing), output ref, then inputs.
    sa_k_scr, sa_v_scr, ca_k_scr, ca_v_scr = refs[-4:]
    out_ref = refs[-5]
    it = iter(refs[:-5])
    xq_ref = next(it)
    xkv_ref = xq_ref if share_x else next(it)
    enc_ref = next(it)
    tgt_bias_ref = None if causal_tgt else next(it)
    src_bias_ref = next(it)
    (sa_wq, sa_bq, sa_wkv, sa_bkv, sa_wo, sa_bo,
     ca_wq, ca_bq, ca_wkv, ca_bkv, ca_wo, ca_bo,
     ff_w1, ff_b1, ff_w2, ff_b2,
     g1, b1, g2, b2, g3, b3) = tuple(it)

    d_model = num_heads * d_k
    qi = pl.program_id(1)

    def project_kv(x_rows, wkv_ref, bkv_ref, k_scr, v_scr):
        skv = x_rows.shape[0]
        kv = jnp.dot(x_rows.astype(compute_dtype), wkv_ref[...],
                     preferred_element_type=jnp.float32) + bkv_ref[...]   # (Sk, 2D)
        k = kv[:, :d_model].reshape(skv, num_heads, d_k)
        v = kv[:, d_model:].reshape(skv, num_heads, d_k)
        k_scr[...] = jnp.transpose(k, (1, 0, 2)).astype(k_scr.dtype)      # (H, Sk, d_k)
        v_scr[...] = jnp.transpose(v, (1, 0, 2)).astype(v_scr.dtype)

    # K/V depend only on the batch index: compute once per batch (the query-tile
    # grid axis is "arbitrary", so qi == 0 runs first for every b on its core).
    @pl.when(qi == 0)
    def _():
        project_kv(xkv_ref[...].astype(jnp.float32), sa_wkv, sa_bkv,
                   sa_k_scr, sa_v_scr)
        project_kv(enc_ref[...].astype(jnp.float32), ca_wkv, ca_bkv,
                   ca_k_scr, ca_v_scr)

    xq = xq_ref[...].astype(jnp.float32)          # (Tq, D)
    tq = xq.shape[0]
    s_kv = sa_k_scr.shape[1]                       # full target sequence length

    if causal_tgt:
        # Generate the causal additive bias in-kernel (no HBM->VMEM bias DMA).
        row = qi * tq + jax.lax.broadcasted_iota(jnp.int32, (tq, s_kv), 0)
        col = jax.lax.broadcasted_iota(jnp.int32, (tq, s_kv), 1)
        tgt_bias = jnp.where(col > row, jnp.float32(-1e9), jnp.float32(0.0))
    else:
        tgt_bias = tgt_bias_ref[...]
    src_bias = src_bias_ref[...]

    # self-attention + residual + norm1
    attn = _attn_block(xq, sa_k_scr[...], sa_v_scr[...], tgt_bias,
                       sa_wq[...], sa_bq[...], sa_wo[...], sa_bo[...],
                       num_heads=num_heads, d_k=d_k,
                       compute_dtype=compute_dtype, approx_recip=approx_recip)
    x1 = _layer_norm(xq + attn, g1[...], b1[...])

    # cross-attention + residual + norm2
    attn = _attn_block(x1, ca_k_scr[...], ca_v_scr[...], src_bias,
                       ca_wq[...], ca_bq[...], ca_wo[...], ca_bo[...],
                       num_heads=num_heads, d_k=d_k,
                       compute_dtype=compute_dtype, approx_recip=approx_recip)
    x2 = _layer_norm(x1 + attn, g2[...], b2[...])

    # position-wise feed-forward + residual + norm3
    # TODO(synk): for production D_FF, tile ff_w1/ff_w2 over D_FF (emit_pipeline or
    # a reduction grid axis) instead of holding them fully resident.
    h = jnp.maximum(
        jnp.dot(x2.astype(compute_dtype), ff_w1[...],
                preferred_element_type=jnp.float32) + ff_b1[...], 0.0)
    ff = jnp.dot(h.astype(compute_dtype), ff_w2[...],
                 preferred_element_type=jnp.float32) + ff_b2[...]
    out_ref[...] = _layer_norm(x2 + ff, g3[...], b3[...]).astype(out_ref.dtype)


def decoder_layer(x, enc_output, src_mask, tgt_mask, params, *, num_heads,
                  compute_dtype=jnp.bfloat16, q_tile=None, causal_tgt=False,
                  approx_recip=None):
    B, S, D = x.shape
    _, Se, _ = enc_output.shape
    assert D % num_heads == 0
    d_k = D // num_heads
    if approx_recip is None:
        # Exact reciprocal in the f32 validation path; EUP approx otherwise.
        approx_recip = (compute_dtype != jnp.float32)

    (sa_wq, sa_bq, sa_wk, sa_bk, sa_wv, sa_bv, sa_wo, sa_bo,
     ca_wq, ca_bq, ca_wk, ca_bk, ca_wv, ca_bv, ca_wo, ca_bo,
     ff_w1, ff_b1, ff_w2, ff_b2,
     g1, b1, g2, b2, g3, b3) = params

    wd = compute_dtype
    # Fused K/V weights (one wide matmul produces K and V); f32 biases added after
    # the f32 MXU accumulation. W_o is pre-reshaped head-major for the head-batched
    # output contraction.
    sa_wkv = jnp.concatenate([sa_wk, sa_wv], axis=1).astype(wd)
    sa_bkv = jnp.concatenate([sa_bk, sa_bv], axis=1).astype(jnp.float32)
    ca_wkv = jnp.concatenate([ca_wk, ca_wv], axis=1).astype(wd)
    ca_bkv = jnp.concatenate([ca_bk, ca_bv], axis=1).astype(jnp.float32)
    sa_wo_h = sa_wo.reshape(num_heads, d_k, D).astype(wd)
    ca_wo_h = ca_wo.reshape(num_heads, d_k, D).astype(wd)

    weights = (sa_wq.astype(wd), sa_bq.astype(jnp.float32), sa_wkv, sa_bkv,
               sa_wo_h, sa_bo.astype(jnp.float32),
               ca_wq.astype(wd), ca_bq.astype(jnp.float32), ca_wkv, ca_bkv,
               ca_wo_h, ca_bo.astype(jnp.float32),
               ff_w1.astype(wd), ff_b1.astype(jnp.float32),
               ff_w2.astype(wd), ff_b2.astype(jnp.float32),
               g1, b1, g2, b2, g3, b3)

    # Additive masks (0 / -1e9). NaN-safe divergence from masked_fill(-inf) for
    # fully-masked rows (uniform softmax instead of NaN).
    neg = jnp.float32(-1e9)
    src_bias = jnp.broadcast_to(
        jnp.where(src_mask == 0, neg, jnp.float32(0.0)).astype(jnp.float32), (S, Se))
    if not causal_tgt:
        tgt_bias = jnp.broadcast_to(
            jnp.where(tgt_mask == 0, neg, jnp.float32(0.0)).astype(jnp.float32), (S, S))

    # Chip-aware query tile: 256 fills the v6e/v7x 256-wide MXU, 128 is enough on v5e.
    if q_tile is None:
        try:
            kind = jax.devices()[0].device_kind.lower()
        except Exception:
            kind = ""
        pref = 128 if "v5" in kind else 256
        q_tile = S
        for cand in (pref, 128):
            if S > cand and S % cand == 0:
                q_tile = cand
                break
    assert S % q_tile == 0 and (q_tile == S or q_tile % 8 == 0), \
        "q_tile must divide S and be a multiple of 8 (or equal S)"
    n_q = S // q_tile
    share_x = (n_q == 1)   # x tile already covers all rows: don't DMA x twice.

    # ------- specs -------
    in_specs = [pl.BlockSpec((None, q_tile, D), lambda b, qi: (b, qi, 0))]  # x (q tile)
    operands = [x]
    if not share_x:
        in_specs.append(pl.BlockSpec((None, S, D), lambda b, qi: (b, 0, 0)))  # x (K/V rows)
        operands.append(x)
    in_specs.append(pl.BlockSpec((None, Se, D), lambda b, qi: (b, 0, 0)))     # enc_output
    operands.append(enc_output)
    if not causal_tgt:
        in_specs.append(pl.BlockSpec((q_tile, S), lambda b, qi: (qi, 0)))     # tgt bias
        operands.append(tgt_bias)
    in_specs.append(pl.BlockSpec((q_tile, Se), lambda b, qi: (qi, 0)))        # src bias
    operands.append(src_bias)

    def rep_spec(arr):
        # Grid-invariant weight block. TODO(synk): at production sizes add
        # pipeline_mode=pl.Buffered(1) to single-buffer these (halves weight VMEM).
        return pl.BlockSpec(arr.shape, lambda b, qi, _nd=arr.ndim: (0,) * _nd)

    in_specs += [rep_spec(w) for w in weights]
    operands += list(weights)

    scratch_shapes = [
        pltpu.VMEM((num_heads, S, d_k), wd),    # self-attn K (per head)
        pltpu.VMEM((num_heads, S, d_k), wd),    # self-attn V
        pltpu.VMEM((num_heads, Se, d_k), wd),   # cross-attn K
        pltpu.VMEM((num_heads, Se, d_k), wd),   # cross-attn V
    ]

    # VMEM budget: double-buffered weights + activations, K/V scratch, score /
    # FFN-hidden intermediates, with headroom.
    d_ff = ff_w1.shape[1]
    item = jnp.dtype(wd).itemsize
    weight_bytes = sum(int(w.size) * w.dtype.itemsize for w in weights)
    scratch_bytes = (2 * S * D + 2 * Se * D) * item
    act_bytes = 2 * 4 * (2 * q_tile * D + S * D + Se * D + q_tile * S + q_tile * Se)
    live_bytes = 4 * (num_heads * q_tile * max(S, Se) + q_tile * d_ff + 4 * q_tile * D)
    est = 2 * weight_bytes + scratch_bytes + act_bytes + live_bytes
    vmem_limit = int(min(100 * 2**20, max(32 * 2**20, 1.5 * est)))

    kernel = functools.partial(
        decoder_layer_kernel, num_heads=num_heads, d_k=d_k, compute_dtype=wd,
        causal_tgt=causal_tgt, share_x=share_x, approx_recip=approx_recip)

    return pl.pallas_call(
        kernel,
        out_shape=jax.ShapeDtypeStruct((B, S, D), x.dtype),
        grid_spec=pltpu.PrefetchScalarGridSpec(
            num_scalar_prefetch=0,
            grid=(B, n_q),
            in_specs=in_specs,
            out_specs=pl.BlockSpec((None, q_tile, D), lambda b, qi: (b, qi, 0)),
            scratch_shapes=scratch_shapes),
        compiler_params=pltpu.CompilerParams(
            # batch axis parallel (megacore / v7x 2-TC); query-tile axis must be
            # "arbitrary" so the per-batch K/V scratch is valid across tiles.
            dimension_semantics=("parallel", "arbitrary"),
            vmem_limit_bytes=vmem_limit),
    )(*operands)


# ------------------------- pure-JAX reference -------------------------

def _ref_mha(q_in, k_in, v_in, mask, wq, bq, wk, bk, wv, bv, wo, bo, num_heads):
    B, Sq, D = q_in.shape
    Sk = k_in.shape[1]
    d_k = D // num_heads
    q = (q_in @ wq + bq).reshape(B, Sq, num_heads, d_k).transpose(0, 2, 1, 3)
    k = (k_in @ wk + bk).reshape(B, Sk, num_heads, d_k).transpose(0, 2, 1, 3)
    v = (v_in @ wv + bv).reshape(B, Sk, num_heads, d_k).transpose(0, 2, 1, 3)
    scores = jnp.einsum('bhqd,bhkd->bhqk', q, k) / math.sqrt(d_k)
    scores = jnp.where(mask[None, None] == 0, -jnp.inf, scores)
    probs = jax.nn.softmax(scores, axis=-1)
    out = jnp.einsum('bhqk,bhkd->bhqd', probs, v)
    out = out.transpose(0, 2, 1, 3).reshape(B, Sq, D)
    return out @ wo + bo


def _ref_ln(x, g, b, eps=1e-5):
    mu = x.mean(-1, keepdims=True)
    var = ((x - mu) ** 2).mean(-1, keepdims=True)
    return (x - mu) / jnp.sqrt(var + eps) * g + b


def decoder_layer_ref(x, enc, src_mask, tgt_mask, params, num_heads):
    (sa_wq, sa_bq, sa_wk, sa_bk, sa_wv, sa_bv, sa_wo, sa_bo,
     ca_wq, ca_bq, ca_wk, ca_bk, ca_wv, ca_bv, ca_wo, ca_bo,
     ff_w1, ff_b1, ff_w2, ff_b2,
     g1, b1, g2, b2, g3, b3) = params
    a = _ref_mha(x, x, x, tgt_mask, sa_wq, sa_bq, sa_wk, sa_bk, sa_wv, sa_bv,
                 sa_wo, sa_bo, num_heads)
    x = _ref_ln(x + a, g1, b1)
    a = _ref_mha(x, enc, enc, src_mask, ca_wq, ca_bq, ca_wk, ca_bk, ca_wv, ca_bv,
                 ca_wo, ca_bo, num_heads)
    x = _ref_ln(x + a, g2, b2)
    h = jnp.maximum(x @ ff_w1 + ff_b1, 0.0)
    ff = h @ ff_w2 + ff_b2
    return _ref_ln(x + ff, g3, b3)


# ----------------------------- main -----------------------------------

if __name__ == "__main__":
    def make_params(key, D, D_FF):
        keys = jax.random.split(key, 20)
        ki = iter(range(20))

        def lin(fan_in, fan_out):
            w = jax.random.normal(keys[next(ki)], (fan_in, fan_out), jnp.float32) * 0.1
            b = jax.random.normal(keys[next(ki)], (1, fan_out), jnp.float32) * 0.1
            return w, b

        sa_wq, sa_bq = lin(D, D); sa_wk, sa_bk = lin(D, D)
        sa_wv, sa_bv = lin(D, D); sa_wo, sa_bo = lin(D, D)
        ca_wq, ca_bq = lin(D, D); ca_wk, ca_bk = lin(D, D)
        ca_wv, ca_bv = lin(D, D); ca_wo, ca_bo = lin(D, D)
        ff_w1, ff_b1 = lin(D, D_FF); ff_w2, ff_b2 = lin(D_FF, D)
        ones = lambda: (jnp.ones((1, D), jnp.float32), jnp.zeros((1, D), jnp.float32))
        g1, b1 = ones(); g2, b2 = ones(); g3, b3 = ones()
        return (sa_wq, sa_bq, sa_wk, sa_bk, sa_wv, sa_bv, sa_wo, sa_bo,
                ca_wq, ca_bq, ca_wk, ca_bk, ca_wv, ca_bv, ca_wo, ca_bo,
                ff_w1, ff_b1, ff_w2, ff_b2, g1, b1, g2, b2, g3, b3)

    key = jax.random.PRNGKey(0)
    kp, kx, ke, kx2, ke2 = jax.random.split(key, 5)

    B, S, Se, D, H, D_FF = 2, 8, 8, 32, 4, 64
    params = make_params(kp, D, D_FF)
    x = jax.random.normal(kx, (B, S, D), jnp.float32)
    enc = jax.random.normal(ke, (B, Se, D), jnp.float32)
    tgt_mask = jnp.tril(jnp.ones((S, S), jnp.float32))   # causal
    src_mask = jnp.ones((S, Se), jnp.float32)            # all attended

    ref = decoder_layer_ref(x, enc, src_mask, tgt_mask, params, H)

    # 1) f32 validation path: in-kernel causal bias, shared x operand (n_q == 1).
    out = decoder_layer(x, enc, src_mask, tgt_mask, params, num_heads=H,
                        compute_dtype=jnp.float32, causal_tgt=True)
    out = jax.block_until_ready(out)
    assert out.shape == (B, S, D)
    assert jnp.allclose(out, ref, rtol=1e-4, atol=1e-4), \
        f"f32 causal max abs err {jnp.max(jnp.abs(out - ref))}"

    # 2) f32, dense (DMA'd additive bias) target-mask path.
    out = decoder_layer(x, enc, src_mask, tgt_mask, params, num_heads=H,
                        compute_dtype=jnp.float32, causal_tgt=False)
    out = jax.block_until_ready(out)
    assert jnp.allclose(out, ref, rtol=1e-4, atol=1e-4), \
        f"f32 dense max abs err {jnp.max(jnp.abs(out - ref))}"

    # 3) production path: bf16 MXU operands, f32 accum/LN/softmax, EUP reciprocal.
    out_bf16 = decoder_layer(x, enc, src_mask, tgt_mask, params, num_heads=H,
                             compute_dtype=jnp.bfloat16, causal_tgt=True)
    out_bf16 = jax.block_until_ready(out_bf16)
    assert jnp.allclose(out_bf16, ref, rtol=1e-1, atol=5e-2), \
        f"bf16 max abs err {jnp.max(jnp.abs(out_bf16 - ref))}"

    # 4) multi-query-tile path (q_tile < S): exercises once-per-batch K/V scratch
    #    reuse across tiles, the separate x K/V operand and the causal tile offset.
    S2 = 16
    x2 = jax.random.normal(kx2, (B, S2, D), jnp.float32)
    enc2 = jax.random.normal(ke2, (B, Se, D), jnp.float32)
    tgt_mask2 = jnp.tril(jnp.ones((S2, S2), jnp.float32))
    src_mask2 = jnp.ones((S2, Se), jnp.float32)
    ref2 = decoder_layer_ref(x2, enc2, src_mask2, tgt_mask2, params, H)
    out2 = decoder_layer(x2, enc2, src_mask2, tgt_mask2, params, num_heads=H,
                         compute_dtype=jnp.float32, causal_tgt=True, q_tile=8)
    out2 = jax.block_until_ready(out2)
    assert jnp.allclose(out2, ref2, rtol=1e-4, atol=1e-4), \
        f"f32 tiled max abs err {jnp.max(jnp.abs(out2 - ref2))}"

    # TODO(synk): nn.Dropout is stateless-identity in eval mode; training-mode
    # dropout (pltpu.prng_random_bits) is not implemented.
    print("KERNEL_OK")
</pallas_src>

<mosaic_0001>
module attributes {stable_mosaic.version = 11 : i64} {
  func.func @decoder_layer_kernel(%arg0: i32, %arg1: i32, %arg2: memref<1x8x32xf32, #tpu.memory_space<vmem>>, %arg3: memref<1x8x32xf32, #tpu.memory_space<vmem>>, %arg4: memref<8x8xf32, #tpu.memory_space<vmem>>, %arg5: memref<32x32xf32, #tpu.memory_space<vmem>>, %arg6: memref<1x32xf32, #tpu.memory_space<vmem>>, %arg7: memref<32x64xf32, #tpu.memory_space<vmem>>, %arg8: memref<1x64xf32, #tpu.memory_space<vmem>>, %arg9: memref<4x8x32xf32, #tpu.memory_space<vmem>>, %arg10: memref<1x32xf32, #tpu.memory_space<vmem>>, %arg11: memref<32x32xf32, #tpu.memory_space<vmem>>, %arg12: memref<1x32xf32, #tpu.memory_space<vmem>>, %arg13: memref<32x64xf32, #tpu.memory_space<vmem>>, %arg14: memref<1x64xf32, #tpu.memory_space<vmem>>, %arg15: memref<4x8x32xf32, #tpu.memory_space<vmem>>, %arg16: memref<1x32xf32, #tpu.memory_space<vmem>>, %arg17: memref<32x64xf32, #tpu.memory_space<vmem>>, %arg18: memref<1x64xf32, #tpu.memory_space<vmem>>, %arg19: memref<64x32xf32, #tpu.memory_space<vmem>>, %arg20: memref<1x32xf32, #tpu.memory_space<vmem>>, %arg21: memref<1x32xf32, #tpu.memory_space<vmem>>, %arg22: memref<1x32xf32, #tpu.memory_space<vmem>>, %arg23: memref<1x32xf32, #tpu.memory_space<vmem>>, %arg24: memref<1x32xf32, #tpu.memory_space<vmem>>, %arg25: memref<1x32xf32, #tpu.memory_space<vmem>>, %arg26: memref<1x32xf32, #tpu.memory_space<vmem>>, %arg27: memref<1x8x32xf32, #tpu.memory_space<vmem>>, %arg28: memref<4x8x8xf32, #tpu.memory_space<vmem>>, %arg29: memref<4x8x8xf32, #tpu.memory_space<vmem>>, %arg30: memref<4x8x8xf32, #tpu.memory_space<vmem>>, %arg31: memref<4x8x8xf32, #tpu.memory_space<vmem>>) attributes {dimension_semantics = [#tpu.dimension_semantics<parallel>, #tpu.dimension_semantics<arbitrary>], iteration_bounds = array<i64: 2, 1>, scalar_prefetch = 0 : i64, scratch_operands = 4 : i64, tpu.core_type = #tpu.core_type<tc>, window_params = [{transform_indices = @transform_0, window_bounds = array<i64: 1, 8, 32>}, {transform_indices = @transform_1, window_bounds = array<i64: 1, 8, 32>}, {transform_indices = @transform_2, window_bounds = array<i64: 8, 8>}, {pipeline_mode = #tpu.pipeline_mode<synchronous>, transform_indices = @transform_3, window_bounds = array<i64: 32, 32>}, {pipeline_mode = #tpu.pipeline_mode<synchronous>, transform_indices = @transform_4, window_bounds = array<i64: 1, 32>}, {pipeline_mode = #tpu.pipeline_mode<synchronous>, transform_indices = @transform_5, window_bounds = array<i64: 32, 64>}, {pipeline_mode = #tpu.pipeline_mode<synchronous>, transform_indices = @transform_6, window_bounds = array<i64: 1, 64>}, {pipeline_mode = #tpu.pipeline_mode<synchronous>, transform_indices = @transform_7, window_bounds = array<i64: 4, 8, 32>}, {pipeline_mode = #tpu.pipeline_mode<synchronous>, transform_indices = @transform_8, window_bounds = array<i64: 1, 32>}, {pipeline_mode = #tpu.pipeline_mode<synchronous>, transform_indices = @transform_9, window_bounds = array<i64: 32, 32>}, {pipeline_mode = #tpu.pipeline_mode<synchronous>, transform_indices = @transform_10, window_bounds = array<i64: 1, 32>}, {pipeline_mode = #tpu.pipeline_mode<synchronous>, transform_indices = @transform_11, window_bounds = array<i64: 32, 64>}, {pipeline_mode = #tpu.pipeline_mode<synchronous>, transform_indices = @transform_12, window_bounds = array<i64: 1, 64>}, {pipeline_mode = #tpu.pipeline_mode<synchronous>, transform_indices = @transform_13, window_bounds = array<i64: 4, 8, 32>}, {pipeline_mode = #tpu.pipeline_mode<synchronous>, transform_indices = @transform_14, window_bounds = array<i64: 1, 32>}, {pipeline_mode = #tpu.pipeline_mode<synchronous>, transform_indices = @transform_15, window_bounds = array<i64: 32, 64>}, {pipeline_mode = #tpu.pipeline_mode<synchronous>, transform_indices = @transform_16, window_bounds = array<i64: 1, 64>}, {pipeline_mode = #tpu.pipeline_mode<synchronous>, transform_indices = @transform_17, window_bounds = array<i64: 64, 32>}, {pipeline_mode = #tpu.pipeline_mode<synchronous>, transform_indices = @transform_18, window_bounds = array<i64: 1, 32>}, {pipeline_mode = #tpu.pipeline_mode<synchronous>, transform_indices = @transform_19, window_bounds = array<i64: 1, 32>}, {pipeline_mode = #tpu.pipeline_mode<synchronous>, transform_indices = @transform_20, window_bounds = array<i64: 1, 32>}, {pipeline_mode = #tpu.pipeline_mode<synchronous>, transform_indices = @transform_21, window_bounds = array<i64: 1, 32>}, {pipeline_mode = #tpu.pipeline_mode<synchronous>, transform_indices = @transform_22, window_bounds = array<i64: 1, 32>}, {pipeline_mode = #tpu.pipeline_mode<synchronous>, transform_indices = @transform_23, window_bounds = array<i64: 1, 32>}, {pipeline_mode = #tpu.pipeline_mode<synchronous>, transform_indices = @transform_24, window_bounds = array<i64: 1, 32>}, {transform_indices = @transform_25, window_bounds = array<i64: 1, 8, 32>}]} {
    %c0_i32 = arith.constant 0 : i32
    %0 = arith.cmpi eq, %arg1, %c0_i32 : i32
    %1 = arith.extui %0 : i1 to i32
    %c0_i32_0 = arith.constant 0 : i32
    %2 = arith.cmpi ne, %1, %c0_i32_0 : i32
    scf.if %2 {
      %c0_93 = arith.constant 0 : index
      %c0_94 = arith.constant 0 : index
      %c0_95 = arith.constant 0 : index
      %163 = vector.load %arg2[%c0_93, %c0_94, %c0_95] : memref<1x8x32xf32, #tpu.memory_space<vmem>>, vector<1x8x32xf32>
      %164 = vector.shape_cast %163 : vector<1x8x32xf32> to vector<8x32xf32>
      %c0_96 = arith.constant 0 : index
      %c0_97 = arith.constant 0 : index
      %165 = vector.load %arg7[%c0_96, %c0_97] : memref<32x64xf32, #tpu.memory_space<vmem>>, vector<32x64xf32>
      %cst_98 = arith.constant dense<0.000000e+00> : vector<8x64xf32>
      %166 = tpu.matmul %164, %165, %cst_98 {dimension_numbers = #tpu.dot_dimension_numbers<[1], [0], [0], [1], [0, 0, 1, 1], [], []>} : vector<8x32xf32>, vector<32x64xf32>, vector<8x64xf32> -> vector<8x64xf32>
      %c0_99 = arith.constant 0 : index
      %c0_100 = arith.constant 0 : index
      %167 = vector.load %arg8[%c0_99, %c0_100] : memref<1x64xf32, #tpu.memory_space<vmem>>, vector<1x64xf32>
      %168 = vector.broadcast %167 : vector<1x64xf32> to vector<8x64xf32>
      %169 = arith.addf %166, %168 : vector<8x64xf32>
      %170 = vector.extract_strided_slice %169 {offsets = [0, 0], sizes = [8, 32], strides = [1, 1]} : vector<8x64xf32> to vector<8x32xf32>
      %171 = vector.shape_cast %170 : vector<8x32xf32> to vector<8x4x8xf32>
      %172 = vector.extract_strided_slice %169 {offsets = [0, 32], sizes = [8, 32], strides = [1, 1]} : vector<8x64xf32> to vector<8x32xf32>
      %173 = vector.shape_cast %172 : vector<8x32xf32> to vector<8x4x8xf32>
      %174 = tpu.transpose %171, [1, 0, 2] : vector<8x4x8xf32> -> vector<4x8x8xf32>
      %c0_101 = arith.constant 0 : index
      %c0_102 = arith.constant 0 : index
      %c0_103 = arith.constant 0 : index
      %175 = vector.load %arg28[%c0_101, %c0_102, %c0_103] : memref<4x8x8xf32, #tpu.memory_space<vmem>>, vector<4x8x8xf32>
      tpu.vector_store %arg28[%c0_101, %c0_102, %c0_103], %174 {strides = array<i32>} : memref<4x8x8xf32, #tpu.memory_space<vmem>>, vector<4x8x8xf32>,
      %176 = tpu.transpose %173, [1, 0, 2] : vector<8x4x8xf32> -> vector<4x8x8xf32>
      %c0_104 = arith.constant 0 : index
      %c0_105 = arith.constant 0 : index
      %c0_106 = arith.constant 0 : index
      %177 = vector.load %arg29[%c0_104, %c0_105, %c0_106] : memref<4x8x8xf32, #tpu.memory_space<vmem>>, vector<4x8x8xf32>
      tpu.vector_store %arg29[%c0_104, %c0_105, %c0_106], %176 {strides = array<i32>} : memref<4x8x8xf32, #tpu.memory_space<vmem>>, vector<4x8x8xf32>,
      %c0_107 = arith.constant 0 : index
      %c0_108 = arith.constant 0 : index
      %c0_109 = arith.constant 0 : index
      %178 = vector.load %arg3[%c0_107, %c0_108, %c0_109] : memref<1x8x32xf32, #tpu.memory_space<vmem>>, vector<1x8x32xf32>
      %179 = vector.shape_cast %178 : vector<1x8x32xf32> to vector<8x32xf32>
      %c0_110 = arith.constant 0 : index
      %c0_111 = arith.constant 0 : index
      %180 = vector.load %arg13[%c0_110, %c0_111] : memref<32x64xf32, #tpu.memory_space<vmem>>, vector<32x64xf32>
      %cst_112 = arith.constant dense<0.000000e+00> : vector<8x64xf32>
      %181 = tpu.matmul %179, %180, %cst_112 {dimension_numbers = #tpu.dot_dimension_numbers<[1], [0], [0], [1], [0, 0, 1, 1], [], []>} : vector<8x32xf32>, vector<32x64xf32>, vector<8x64xf32> -> vector<8x64xf32>
      %c0_113 = arith.constant 0 : index
      %c0_114 = arith.constant 0 : index
      %182 = vector.load %arg14[%c0_113, %c0_114] : memref<1x64xf32, #tpu.memory_space<vmem>>, vector<1x64xf32>
      %183 = vector.broadcast %182 : vector<1x64xf32> to vector<8x64xf32>
      %184 = arith.addf %181, %183 : vector<8x64xf32>
      %185 = vector.extract_strided_slice %184 {offsets = [0, 0], sizes = [8, 32], strides = [1, 1]} : vector<8x64xf32> to vector<8x32xf32>
      %186 = vector.shape_cast %185 : vector<8x32xf32> to vector<8x4x8xf32>
      %187 = vector.extract_strided_slice %184 {offsets = [0, 32], sizes = [8, 32], strides = [1, 1]} : vector<8x64xf32> to vector<8x32xf32>
      %188 = vector.shape_cast %187 : vector<8x32xf32> to vector<8x4x8xf32>
      %189 = tpu.transpose %186, [1, 0, 2] : vector<8x4x8xf32> -> vector<4x8x8xf32>
      %c0_115 = arith.constant 0 : index
      %c0_116 = arith.constant 0 : index
      %c0_117 = arith.constant 0 : index
      %190 = vector.load %arg30[%c0_115, %c0_116, %c0_117] : memref<4x8x8xf32, #tpu.memory_space<vmem>>, vector<4x8x8xf32>
      tpu.vector_store %arg30[%c0_115, %c0_116, %c0_117], %189 {strides = array<i32>} : memref<4x8x8xf32, #tpu.memory_space<vmem>>, vector<4x8x8xf32>,
      %191 = tpu.transpose %188, [1, 0, 2] : vector<8x4x8xf32> -> vector<4x8x8xf32>
      %c0_118 = arith.constant 0 : index
      %c0_119 = arith.constant 0 : index
      %c0_120 = arith.constant 0 : index
      %192 = vector.load %arg31[%c0_118, %c0_119, %c0_120] : memref<4x8x8xf32, #tpu.memory_space<vmem>>, vector<4x8x8xf32>
      tpu.vector_store %arg31[%c0_118, %c0_119, %c0_120], %191 {strides = array<i32>} : memref<4x8x8xf32, #tpu.memory_space<vmem>>, vector<4x8x8xf32>,
    } else {
    }
    %c0 = arith.constant 0 : index
    %c0_1 = arith.constant 0 : index
    %c0_2 = arith.constant 0 : index
    %3 = vector.load %arg2[%c0, %c0_1, %c0_2] : memref<1x8x32xf32, #tpu.memory_space<vmem>>, vector<1x8x32xf32>
    %4 = vector.shape_cast %3 : vector<1x8x32xf32> to vector<8x32xf32>
    %c8_i32 = arith.constant 8 : i32
    %5 = arith.muli %arg1, %c8_i32 : i32
    %6 = tpu.iota {dimensions = array<i32: 0>} : vector<8x8xi32>
    %7 = vector.broadcast %5 : i32 to vector<8x8xi32>
    %8 = arith.addi %7, %6 : vector<8x8xi32>
    %9 = tpu.iota {dimensions = array<i32: 1>} : vector<8x8xi32>
    %10 = arith.cmpi sgt, %9, %8 : vector<8x8xi32>
    %cst = arith.constant -1.000000e+09 : f32
    %cst_3 = arith.constant 0.000000e+00 : f32
    %11 = vector.broadcast %cst : f32 to vector<8x8xf32>
    %12 = vector.broadcast %cst_3 : f32 to vector<8x8xf32>
    %13 = arith.select %10, %11, %12 : vector<8x8xi1>, vector<8x8xf32>
    %c0_4 = arith.constant 0 : index
    %c0_5 = arith.constant 0 : index
    %14 = vector.load %arg4[%c0_4, %c0_5] : memref<8x8xf32, #tpu.memory_space<vmem>>, vector<8x8xf32>
    %c0_6 = arith.constant 0 : index
    %c0_7 = arith.constant 0 : index
    %c0_8 = arith.constant 0 : index
    %15 = vector.load %arg28[%c0_6, %c0_7, %c0_8] : memref<4x8x8xf32, #tpu.memory_space<vmem>>, vector<4x8x8xf32>
    %c0_9 = arith.constant 0 : index
    %c0_10 = arith.constant 0 : index
    %c0_11 = arith.constant 0 : index
    %16 = vector.load %arg29[%c0_9, %c0_10, %c0_11] : memref<4x8x8xf32, #tpu.memory_space<vmem>>, vector<4x8x8xf32>
    %c0_12 = arith.constant 0 : index
    %c0_13 = arith.constant 0 : index
    %17 = vector.load %arg5[%c0_12, %c0_13] : memref<32x32xf32, #tpu.memory_space<vmem>>, vector<32x32xf32>
    %c0_14 = arith.constant 0 : index
    %c0_15 = arith.constant 0 : index
    %18 = vector.load %arg6[%c0_14, %c0_15] : memref<1x32xf32, #tpu.memory_space<vmem>>, vector<1x32xf32>
    %c0_16 = arith.constant 0 : index
    %c0_17 = arith.constant 0 : index
    %c0_18 = arith.constant 0 : index
    %19 = vector.load %arg9[%c0_16, %c0_17, %c0_18] : memref<4x8x32xf32, #tpu.memory_space<vmem>>, vector<4x8x32xf32>
    %c0_19 = arith.constant 0 : index
    %c0_20 = arith.constant 0 : index
    %20 = vector.load %arg10[%c0_19, %c0_20] : memref<1x32xf32, #tpu.memory_space<vmem>>, vector<1x32xf32>
    %cst_21 = arith.constant dense<0.000000e+00> : vector<8x32xf32>
    %21 = tpu.matmul %4, %17, %cst_21 {dimension_numbers = #tpu.dot_dimension_numbers<[1], [0], [0], [1], [0, 0, 1, 1], [], []>} : vector<8x32xf32>, vector<32x32xf32>, vector<8x32xf32> -> vector<8x32xf32>
    %22 = vector.broadcast %18 : vector<1x32xf32> to vector<8x32xf32>
    %23 = arith.addf %21, %22 : vector<8x32xf32>
    %24 = vector.shape_cast %23 : vector<8x32xf32> to vector<8x4x8xf32>
    %25 = tpu.transpose %24, [1, 0, 2] : vector<8x4x8xf32> -> vector<4x8x8xf32>
    "tpu.trace_start"() <{level = 10 : i32, message = "hqd,hkd->hqk"}> : () -> ()
    %cst_22 = arith.constant dense<0.000000e+00> : vector<4x8x8xf32>
    %26 = tpu.matmul %25, %15, %cst_22 {dimension_numbers = #tpu.dot_dimension_numbers<[2], [2], [1], [1], [0, 0, 0, 1, 1, 1], [0], [0]>} : vector<4x8x8xf32>, vector<4x8x8xf32>, vector<4x8x8xf32> -> vector<4x8x8xf32>
    "tpu.trace_stop"() : () -> ()
    %cst_23 = arith.constant 0.353553385 : f32
    %27 = vector.broadcast %cst_23 : f32 to vector<4x8x8xf32>
    %28 = arith.mulf %26, %27 : vector<4x8x8xf32>
    %29 = vector.shape_cast %13 : vector<8x8xf32> to vector<1x8x8xf32>
    %30 = vector.broadcast %29 : vector<1x8x8xf32> to vector<4x8x8xf32>
    %31 = arith.addf %28, %30 : vector<4x8x8xf32>
    %cst_24 = arith.constant dense<0xFF800000> : vector<4x8xf32>
    %32 = vector.multi_reduction <maximumf>, %31, %cst_24 [2] : vector<4x8x8xf32> to vector<4x8xf32>
    %33 = vector.shape_cast %32 : vector<4x8xf32> to vector<4x8x1xf32>
    %34 = vector.broadcast %33 : vector<4x8x1xf32> to vector<4x8x8xf32>
    %35 = arith.subf %31, %34 : vector<4x8x8xf32>
    %36 = math.exp %35 : vector<4x8x8xf32>
    %cst_25 = arith.constant dense<0.000000e+00> : vector<4x8xf32>
    %37 = vector.multi_reduction <add>, %36, %cst_25 [2] : vector<4x8x8xf32> to vector<4x8xf32>
    %38 = vector.shape_cast %37 : vector<4x8xf32> to vector<4x8x1xf32>
    %39 = tpu.reciprocal %38 : vector<4x8x1xf32> -> vector<4x8x1xf32>
    %40 = vector.broadcast %39 : vector<4x8x1xf32> to vector<4x8x8xf32>
    %41 = arith.mulf %36, %40 : vector<4x8x8xf32>
    "tpu.trace_start"() <{level = 10 : i32, message = "hqk,hkd->hqd"}> : () -> ()
    %cst_26 = arith.constant dense<0.000000e+00> : vector<4x8x8xf32>
    %42 = tpu.matmul %41, %16, %cst_26 {dimension_numbers = #tpu.dot_dimension_numbers<[2], [1], [1], [2], [0, 0, 0, 1, 1, 2], [0], [0]>} : vector<4x8x8xf32>, vector<4x8x8xf32>, vector<4x8x8xf32> -> vector<4x8x8xf32>
    "tpu.trace_stop"() : () -> ()
    "tpu.trace_start"() <{level = 10 : i32, message = "hqd,hde->hqe"}> : () -> ()
    %cst_27 = arith.constant dense<0.000000e+00> : vector<4x8x32xf32>
    %43 = tpu.matmul %42, %19, %cst_27 {dimension_numbers = #tpu.dot_dimension_numbers<[2], [1], [1], [2], [0, 0, 0, 1, 1, 2], [0], [0]>} : vector<4x8x8xf32>, vector<4x8x32xf32>, vector<4x8x32xf32> -> vector<4x8x32xf32>
    "tpu.trace_stop"() : () -> ()
    %cst_28 = arith.constant dense<0.000000e+00> : vector<8x32xf32>
    %44 = vector.multi_reduction <add>, %43, %cst_28 [0] : vector<4x8x32xf32> to vector<8x32xf32>
    %45 = vector.broadcast %20 : vector<1x32xf32> to vector<8x32xf32>
    %46 = arith.addf %44, %45 : vector<8x32xf32>
    %47 = arith.addf %4, %46 : vector<8x32xf32>
    %c0_29 = arith.constant 0 : index
    %c0_30 = arith.constant 0 : index
    %48 = vector.load %arg21[%c0_29, %c0_30] : memref<1x32xf32, #tpu.memory_space<vmem>>, vector<1x32xf32>
    %c0_31 = arith.constant 0 : index
    %c0_32 = arith.constant 0 : index
    %49 = vector.load %arg22[%c0_31, %c0_32] : memref<1x32xf32, #tpu.memory_space<vmem>>, vector<1x32xf32>
    %cst_33 = arith.constant dense<0.000000e+00> : vector<8xf32>
    %50 = vector.multi_reduction <add>, %47, %cst_33 [1] : vector<8x32xf32> to vector<8xf32>
    %51 = vector.shape_cast %50 : vector<8xf32> to vector<8x1xf32>
    %cst_34 = arith.constant 3.200000e+01 : f32
    %52 = vector.broadcast %cst_34 : f32 to vector<8x1xf32>
    %53 = arith.divf %51, %52 : vector<8x1xf32>
    %54 = vector.broadcast %53 : vector<8x1xf32> to vector<8x32xf32>
    %55 = arith.subf %47, %54 : vector<8x32xf32>
    %56 = arith.mulf %55, %55 : vector<8x32xf32>
    %cst_35 = arith.constant dense<0.000000e+00> : vector<8xf32>
    %57 = vector.multi_reduction <add>, %56, %cst_35 [1] : vector<8x32xf32> to vector<8xf32>
    %58 = vector.shape_cast %57 : vector<8xf32> to vector<8x1xf32>
    %cst_36 = arith.constant 3.200000e+01 : f32
    %59 = vector.broadcast %cst_36 : f32 to vector<8x1xf32>
    %60 = arith.divf %58, %59 : vector<8x1xf32>
    %cst_37 = arith.constant 9.99999974E-6 : f32
    %61 = vector.broadcast %cst_37 : f32 to vector<8x1xf32>
    %62 = arith.addf %60, %61 : vector<8x1xf32>
    %63 = math.rsqrt %62 : vector<8x1xf32>
    %64 = vector.broadcast %63 : vector<8x1xf32> to vector<8x32xf32>
    %65 = arith.mulf %55, %64 : vector<8x32xf32>
    %66 = vector.broadcast %48 : vector<1x32xf32> to vector<8x32xf32>
    %67 = arith.mulf %65, %66 : vector<8x32xf32>
    %68 = vector.broadcast %49 : vector<1x32xf32> to vector<8x32xf32>
    %69 = arith.addf %67, %68 : vector<8x32xf32>
    %c0_38 = arith.constant 0 : index
    %c0_39 = arith.constant 0 : index
    %c0_40 = arith.constant 0 : index
    %70 = vector.load %arg30[%c0_38, %c0_39, %c0_40] : memref<4x8x8xf32, #tpu.memory_space<vmem>>, vector<4x8x8xf32>
    %c0_41 = arith.constant 0 : index
    %c0_42 = arith.constant 0 : index
    %c0_43 = arith.constant 0 : index
    %71 = vector.load %arg31[%c0_41, %c0_42, %c0_43] : memref<4x8x8xf32, #tpu.memory_space<vmem>>, vector<4x8x8xf32>
    %c0_44 = arith.constant 0 : index
    %c0_45 = arith.constant 0 : index
    %72 = vector.load %arg11[%c0_44, %c0_45] : memref<32x32xf32, #tpu.memory_space<vmem>>, vector<32x32xf32>
    %c0_46 = arith.constant 0 : index
    %c0_47 = arith.constant 0 : index
    %73 = vector.load %arg12[%c0_46, %c0_47] : memref<1x32xf32, #tpu.memory_space<vmem>>, vector<1x32xf32>
    %c0_48 = arith.constant 0 : index
    %c0_49 = arith.constant 0 : index
    %c0_50 = arith.constant 0 : index
    %74 = vector.load %arg15[%c0_48, %c0_49, %c0_50] : memref<4x8x32xf32, #tpu.memory_space<vmem>>, vector<4x8x32xf32>
    %c0_51 = arith.constant 0 : index
    %c0_52 = arith.constant 0 : index
    %75 = vector.load %arg16[%c0_51, %c0_52] : memref<1x32xf32, #tpu.memory_space<vmem>>, vector<1x32xf32>
    %cst_53 = arith.constant dense<0.000000e+00> : vector<8x32xf32>
    %76 = tpu.matmul %69, %72, %cst_53 {dimension_numbers = #tpu.dot_dimension_numbers<[1], [0], [0], [1], [0, 0, 1, 1], [], []>} : vector<8x32xf32>, vector<32x32xf32>, vector<8x32xf32> -> vector<8x32xf32>
    %77 = vector.broadcast %73 : vector<1x32xf32> to vector<8x32xf32>
    %78 = arith.addf %76, %77 : vector<8x32xf32>
    %79 = vector.shape_cast %78 : vector<8x32xf32> to vector<8x4x8xf32>
    %80 = tpu.transpose %79, [1, 0, 2] : vector<8x4x8xf32> -> vector<4x8x8xf32>
    "tpu.trace_start"() <{level = 10 : i32, message = "hqd,hkd->hqk"}> : () -> ()
    %cst_54 = arith.constant dense<0.000000e+00> : vector<4x8x8xf32>
    %81 = tpu.matmul %80, %70, %cst_54 {dimension_numbers = #tpu.dot_dimension_numbers<[2], [2], [1], [1], [0, 0, 0, 1, 1, 1], [0], [0]>} : vector<4x8x8xf32>, vector<4x8x8xf32>, vector<4x8x8xf32> -> vector<4x8x8xf32>
    "tpu.trace_stop"() : () -> ()
    %cst_55 = arith.constant 0.353553385 : f32
    %82 = vector.broadcast %cst_55 : f32 to vector<4x8x8xf32>
    %83 = arith.mulf %81, %82 : vector<4x8x8xf32>
    %84 = vector.shape_cast %14 : vector<8x8xf32> to vector<1x8x8xf32>
    %85 = vector.broadcast %84 : vector<1x8x8xf32> to vector<4x8x8xf32>
    %86 = arith.addf %83, %85 : vector<4x8x8xf32>
    %cst_56 = arith.constant dense<0xFF800000> : vector<4x8xf32>
    %87 = vector.multi_reduction <maximumf>, %86, %cst_56 [2] : vector<4x8x8xf32> to vector<4x8xf32>
    %88 = vector.shape_cast %87 : vector<4x8xf32> to vector<4x8x1xf32>
    %89 = vector.broadcast %88 : vector<4x8x1xf32> to vector<4x8x8xf32>
    %90 = arith.subf %86, %89 : vector<4x8x8xf32>
    %91 = math.exp %90 : vector<4x8x8xf32>
    %cst_57 = arith.constant dense<0.000000e+00> : vector<4x8xf32>
    %92 = vector.multi_reduction <add>, %91, %cst_57 [2] : vector<4x8x8xf32> to vector<4x8xf32>
    %93 = vector.shape_cast %92 : vector<4x8xf32> to vector<4x8x1xf32>
    %94 = tpu.reciprocal %93 : vector<4x8x1xf32> -> vector<4x8x1xf32>
    %95 = vector.broadcast %94 : vector<4x8x1xf32> to vector<4x8x8xf32>
    %96 = arith.mulf %91, %95 : vector<4x8x8xf32>
    "tpu.trace_start"() <{level = 10 : i32, message = "hqk,hkd->hqd"}> : () -> ()
    %cst_58 = arith.constant dense<0.000000e+00> : vector<4x8x8xf32>
    %97 = tpu.matmul %96, %71, %cst_58 {dimension_numbers = #tpu.dot_dimension_numbers<[2], [1], [1], [2], [0, 0, 0, 1, 1, 2], [0], [0]>} : vector<4x8x8xf32>, vector<4x8x8xf32>, vector<4x8x8xf32> -> vector<4x8x8xf32>
    "tpu.trace_stop"() : () -> ()
    "tpu.trace_start"() <{level = 10 : i32, message = "hqd,hde->hqe"}> : () -> ()
    %cst_59 = arith.constant dense<0.000000e+00> : vector<4x8x32xf32>
    %98 = tpu.matmul %97, %74, %cst_59 {dimension_numbers = #tpu.dot_dimension_numbers<[2], [1], [1], [2], [0, 0, 0, 1, 1, 2], [0], [0]>} : vector<4x8x8xf32>, vector<4x8x32xf32>, vector<4x8x32xf32> -> vector<4x8x32xf32>
    "tpu.trace_stop"() : () -> ()
    %cst_60 = arith.constant dense<0.000000e+00> : vector<8x32xf32>
    %99 = vector.multi_reduction <add>, %98, %cst_60 [0] : vector<4x8x32xf32> to vector<8x32xf32>
    %100 = vector.broadcast %75 : vector<1x32xf32> to vector<8x32xf32>
    %101 = arith.addf %99, %100 : vector<8x32xf32>
    %102 = arith.addf %69, %101 : vector<8x32xf32>
    %c0_61 = arith.constant 0 : index
    %c0_62 = arith.constant 0 : index
    %103 = vector.load %arg23[%c0_61, %c0_62] : memref<1x32xf32, #tpu.memory_space<vmem>>, vector<1x32xf32>
    %c0_63 = arith.constant 0 : index
    %c0_64 = arith.constant 0 : index
    %104 = vector.load %arg24[%c0_63, %c0_64] : memref<1x32xf32, #tpu.memory_space<vmem>>, vector<1x32xf32>
    %cst_65 = arith.constant dense<0.000000e+00> : vector<8xf32>
    %105 = vector.multi_reduction <add>, %102, %cst_65 [1] : vector<8x32xf32> to vector<8xf32>
    %106 = vector.shape_cast %105 : vector<8xf32> to vector<8x1xf32>
    %cst_66 = arith.constant 3.200000e+01 : f32
    %107 = vector.broadcast %cst_66 : f32 to vector<8x1xf32>
    %108 = arith.divf %106, %107 : vector<8x1xf32>
    %109 = vector.broadcast %108 : vector<8x1xf32> to vector<8x32xf32>
    %110 = arith.subf %102, %109 : vector<8x32xf32>
    %111 = arith.mulf %110, %110 : vector<8x32xf32>
    %cst_67 = arith.constant dense<0.000000e+00> : vector<8xf32>
    %112 = vector.multi_reduction <add>, %111, %cst_67 [1] : vector<8x32xf32> to vector<8xf32>
    %113 = vector.shape_cast %112 : vector<8xf32> to vector<8x1xf32>
    %cst_68 = arith.constant 3.200000e+01 : f32
    %114 = vector.broadcast %cst_68 : f32 to vector<8x1xf32>
    %115 = arith.divf %113, %114 : vector<8x1xf32>
    %cst_69 = arith.constant 9.99999974E-6 : f32
    %116 = vector.broadcast %cst_69 : f32 to vector<8x1xf32>
    %117 = arith.addf %115, %116 : vector<8x1xf32>
    %118 = math.rsqrt %117 : vector<8x1xf32>
    %119 = vector.broadcast %118 : vector<8x1xf32> to vector<8x32xf32>
    %120 = arith.mulf %110, %119 : vector<8x32xf32>
    %121 = vector.broadcast %103 : vector<1x32xf32> to vector<8x32xf32>
    %122 = arith.mulf %120, %121 : vector<8x32xf32>
    %123 = vector.broadcast %104 : vector<1x32xf32> to vector<8x32xf32>
    %124 = arith.addf %122, %123 : vector<8x32xf32>
    %c0_70 = arith.constant 0 : index
    %c0_71 = arith.constant 0 : index
    %125 = vector.load %arg17[%c0_70, %c0_71] : memref<32x64xf32, #tpu.memory_space<vmem>>, vector<32x64xf32>
    %cst_72 = arith.constant dense<0.000000e+00> : vector<8x64xf32>
    %126 = tpu.matmul %124, %125, %cst_72 {dimension_numbers = #tpu.dot_dimension_numbers<[1], [0], [0], [1], [0, 0, 1, 1], [], []>} : vector<8x32xf32>, vector<32x64xf32>, vector<8x64xf32> -> vector<8x64xf32>
    %c0_73 = arith.constant 0 : index
    %c0_74 = arith.constant 0 : index
    %127 = vector.load %arg18[%c0_73, %c0_74] : memref<1x64xf32, #tpu.memory_space<vmem>>, vector<1x64xf32>
    %128 = vector.broadcast %127 : vector<1x64xf32> to vector<8x64xf32>
    %129 = arith.addf %126, %128 : vector<8x64xf32>
    %cst_75 = arith.constant 0.000000e+00 : f32
    %130 = vector.broadcast %cst_75 : f32 to vector<8x64xf32>
    %131 = arith.maximumf %129, %130 : vector<8x64xf32>
    %c0_76 = arith.constant 0 : index
    %c0_77 = arith.constant 0 : index
    %132 = vector.load %arg19[%c0_76, %c0_77] : memref<64x32xf32, #tpu.memory_space<vmem>>, vector<64x32xf32>
    %cst_78 = arith.constant dense<0.000000e+00> : vector<8x32xf32>
    %133 = tpu.matmul %131, %132, %cst_78 {dimension_numbers = #tpu.dot_dimension_numbers<[1], [0], [0], [1], [0, 0, 1, 1], [], []>} : vector<8x64xf32>, vector<64x32xf32>, vector<8x32xf32> -> vector<8x32xf32>
    %c0_79 = arith.constant 0 : index
    %c0_80 = arith.constant 0 : index
    %134 = vector.load %arg20[%c0_79, %c0_80] : memref<1x32xf32, #tpu.memory_space<vmem>>, vector<1x32xf32>
    %135 = vector.broadcast %134 : vector<1x32xf32> to vector<8x32xf32>
    %136 = arith.addf %133, %135 : vector<8x32xf32>
    %137 = arith.addf %124, %136 : vector<8x32xf32>
    %c0_81 = arith.constant 0 : index
    %c0_82 = arith.constant 0 : index
    %138 = vector.load %arg25[%c0_81, %c0_82] : memref<1x32xf32, #tpu.memory_space<vmem>>, vector<1x32xf32>
    %c0_83 = arith.constant 0 : index
    %c0_84 = arith.constant 0 : index
    %139 = vector.load %arg26[%c0_83, %c0_84] : memref<1x32xf32, #tpu.memory_space<vmem>>, vector<1x32xf32>
    %cst_85 = arith.constant dense<0.000000e+00> : vector<8xf32>
    %140 = vector.multi_reduction <add>, %137, %cst_85 [1] : vector<8x32xf32> to vector<8xf32>
    %141 = vector.shape_cast %140 : vector<8xf32> to vector<8x1xf32>
    %cst_86 = arith.constant 3.200000e+01 : f32
    %142 = vector.broadcast %cst_86 : f32 to vector<8x1xf32>
    %143 = arith.divf %141, %142 : vector<8x1xf32>
    %144 = vector.broadcast %143 : vector<8x1xf32> to vector<8x32xf32>
    %145 = arith.subf %137, %144 : vector<8x32xf32>
    %146 = arith.mulf %145, %145 : vector<8x32xf32>
    %cst_87 = arith.constant dense<0.000000e+00> : vector<8xf32>
    %147 = vector.multi_reduction <add>, %146, %cst_87 [1] : vector<8x32xf32> to vector<8xf32>
    %148 = vector.shape_cast %147 : vector<8xf32> to vector<8x1xf32>
    %cst_88 = arith.constant 3.200000e+01 : f32
    %149 = vector.broadcast %cst_88 : f32 to vector<8x1xf32>
    %150 = arith.divf %148, %149 : vector<8x1xf32>
    %cst_89 = arith.constant 9.99999974E-6 : f32
    %151 = vector.broadcast %cst_89 : f32 to vector<8x1xf32>
    %152 = arith.addf %150, %151 : vector<8x1xf32>
    %153 = math.rsqrt %152 : vector<8x1xf32>
    %154 = vector.broadcast %153 : vector<8x1xf32> to vector<8x32xf32>
    %155 = arith.mulf %145, %154 : vector<8x32xf32>
    %156 = vector.broadcast %138 : vector<1x32xf32> to vector<8x32xf32>
    %157 = arith.mulf %155, %156 : vector<8x32xf32>
    %158 = vector.broadcast %139 : vector<1x32xf32> to vector<8x32xf32>
    %159 = arith.addf %157, %158 : vector<8x32xf32>
    %c0_90 = arith.constant 0 : index
    %c0_91 = arith.constant 0 : index
    %c0_92 = arith.constant 0 : index
    %160 = vector.load %arg27[%c0_90, %c0_91, %c0_92] : memref<1x8x32xf32, #tpu.memory_space<vmem>>, vector<1x8x32xf32>
    %161 = vector.shape_cast %160 : vector<1x8x32xf32> to vector<8x32xf32>
    %162 = vector.shape_cast %159 : vector<8x32xf32> to vector<1x8x32xf32>
    tpu.vector_store %arg27[%c0_90, %c0_91, %c0_92], %162 {strides = array<i32>} : memref<1x8x32xf32, #tpu.memory_space<vmem>>, vector<1x8x32xf32>,
    return
  }
  func.func @transform_0(%arg0: i32, %arg1: i32) -> (i32, i32, i32) {
    %c0_i32 = arith.constant 0 : i32
    %c0_i32_0 = arith.constant 0 : i32
    return %arg0, %arg1, %c0_i32 : i32, i32, i32
  }
  func.func @transform_1(%arg0: i32, %arg1: i32) -> (i32, i32, i32) {
    %c0_i32 = arith.constant 0 : i32
    %c0_i32_0 = arith.constant 0 : i32
    %c0_i32_1 = arith.constant 0 : i32
    return %arg0, %c0_i32, %c0_i32_0 : i32, i32, i32
  }
  func.func @transform_2(%arg0: i32, %arg1: i32) -> (i32, i32) {
    %c0_i32 = arith.constant 0 : i32
    %c0_i32_0 = arith.constant 0 : i32
    return %arg1, %c0_i32 : i32, i32
  }
  func.func @transform_3(%arg0: i32, %arg1: i32) -> (i32, i32) {
    %c0_i32 = arith.constant 0 : i32
    %c0_i32_0 = arith.constant 0 : i32
    %c0_i32_1 = arith.constant 0 : i32
    return %c0_i32, %c0_i32_0 : i32, i32
  }
  func.func @transform_4(%arg0: i32, %arg1: i32) -> (i32, i32) {
    %c0_i32 = arith.constant 0 : i32
    %c0_i32_0 = arith.constant 0 : i32
    %c0_i32_1 = arith.constant 0 : i32
    return %c0_i32, %c0_i32_0 : i32, i32
  }
  func.func @transform_5(%arg0: i32, %arg1: i32) -> (i32, i32) {
    %c0_i32 = arith.constant 0 : i32
    %c0_i32_0 = arith.constant 0 : i32
    %c0_i32_1 = arith.constant 0 : i32
    return %c0_i32, %c0_i32_0 : i32, i32
  }
  func.func @transform_6(%arg0: i32, %arg1: i32) -> (i32, i32) {
    %c0_i32 = arith.constant 0 : i32
    %c0_i32_0 = arith.constant 0 : i32
    %c0_i32_1 = arith.constant 0 : i32
    return %c0_i32, %c0_i32_0 : i32, i32
  }
  func.func @transform_7(%arg0: i32, %arg1: i32) -> (i32, i32, i32) {
    %c0_i32 = arith.constant 0 : i32
    %c0_i32_0 = arith.constant 0 : i32
    %c0_i32_1 = arith.constant 0 : i32
    %c0_i32_2 = arith.constant 0 : i32
    return %c0_i32, %c0_i32_0, %c0_i32_1 : i32, i32, i32
  }
  func.func @transform_8(%arg0: i32, %arg1: i32) -> (i32, i32) {
    %c0_i32 = arith.constant 0 : i32
    %c0_i32_0 = arith.constant 0 : i32
    %c0_i32_1 = arith.constant 0 : i32
    return %c0_i32, %c0_i32_0 : i32, i32
  }
  func.func @transform_9(%arg0: i32, %arg1: i32) -> (i32, i32) {
    %c0_i32 = arith.constant 0 : i32
    %c0_i32_0 = arith.constant 0 : i32
    %c0_i32_1 = arith.constant 0 : i32
    return %c0_i32, %c0_i32_0 : i32, i32
  }
  func.func @transform_10(%arg0: i32, %arg1: i32) -> (i32, i32) {
    %c0_i32 = arith.constant 0 : i32
    %c0_i32_0 = arith.constant 0 : i32
    %c0_i32_1 = arith.constant 0 : i32
    return %c0_i32, %c0_i32_0 : i32, i32
  }
  func.func @transform_11(%arg0: i32, %arg1: i32) -> (i32, i32) {
    %c0_i32 = arith.constant 0 : i32
    %c0_i32_0 = arith.constant 0 : i32
    %c0_i32_1 = arith.constant 0 : i32
    return %c0_i32, %c0_i32_0 : i32, i32
  }
  func.func @transform_12(%arg0: i32, %arg1: i32) -> (i32, i32) {
    %c0_i32 = arith.constant 0 : i32
    %c0_i32_0 = arith.constant 0 : i32
    %c0_i32_1 = arith.constant 0 : i32
    return %c0_i32, %c0_i32_0 : i32, i32
  }
  func.func @transform_13(%arg0: i32, %arg1: i32) -> (i32, i32, i32) {
    %c0_i32 = arith.constant 0 : i32
    %c0_i32_0 = arith.constant 0 : i32
    %c0_i32_1 = arith.constant 0 : i32
    %c0_i32_2 = arith.constant 0 : i32
    return %c0_i32, %c0_i32_0, %c0_i32_1 : i32, i32, i32
  }
  func.func @transform_14(%arg0: i32, %arg1: i32) -> (i32, i32) {
    %c0_i32 = arith.constant 0 : i32
    %c0_i32_0 = arith.constant 0 : i32
    %c0_i32_1 = arith.constant 0 : i32
    return %c0_i32, %c0_i32_0 : i32, i32
  }
  func.func @transform_15(%arg0: i32, %arg1: i32) -> (i32, i32) {
    %c0_i32 = arith.constant 0 : i32
    %c0_i32_0 = arith.constant 0 : i32
    %c0_i32_1 = arith.constant 0 : i32
    return %c0_i32, %c0_i32_0 : i32, i32
  }
  func.func @transform_16(%arg0: i32, %arg1: i32) -> (i32, i32) {
    %c0_i32 = arith.constant 0 : i32
    %c0_i32_0 = arith.constant 0 : i32
    %c0_i32_1 = arith.constant 0 : i32
    return %c0_i32, %c0_i32_0 : i32, i32
  }
  func.func @transform_17(%arg0: i32, %arg1: i32) -> (i32, i32) {
    %c0_i32 = arith.constant 0 : i32
    %c0_i32_0 = arith.constant 0 : i32
    %c0_i32_1 = arith.constant 0 : i32
    return %c0_i32, %c0_i32_0 : i32, i32
  }
  func.func @transform_18(%arg0: i32, %arg1: i32) -> (i32, i32) {
    %c0_i32 = arith.constant 0 : i32
    %c0_i32_0 = arith.constant 0 : i32
    %c0_i32_1 = arith.constant 0 : i32
    return %c0_i32, %c0_i32_0 : i32, i32
  }
  func.func @transform_19(%arg0: i32, %arg1: i32) -> (i32, i32) {
    %c0_i32 = arith.constant 0 : i32
    %c0_i32_0 = arith.constant 0 : i32
    %c0_i32_1 = arith.constant 0 : i32
    return %c0_i32, %c0_i32_0 : i32, i32
  }
  func.func @transform_20(%arg0: i32, %arg1: i32) -> (i32, i32) {
    %c0_i32 = arith.constant 0 : i32
    %c0_i32_0 = arith.constant 0 : i32
    %c0_i32_1 = arith.constant 0 : i32
    return %c0_i32, %c0_i32_0 : i32, i32
  }
  func.func @transform_21(%arg0: i32, %arg1: i32) -> (i32, i32) {
    %c0_i32 = arith.constant 0 : i32
    %c0_i32_0 = arith.constant 0 : i32
    %c0_i32_1 = arith.constant 0 : i32
    return %c0_i32, %c0_i32_0 : i32, i32
  }
  func.func @transform_22(%arg0: i32, %arg1: i32) -> (i32, i32) {
    %c0_i32 = arith.constant 0 : i32
    %c0_i32_0 = arith.constant 0 : i32
    %c0_i32_1 = arith.constant 0 : i32
    return %c0_i32, %c0_i32_0 : i32, i32
  }
  func.func @transform_23(%arg0: i32, %arg1: i32) -> (i32, i32) {
    %c0_i32 = arith.constant 0 : i32
    %c0_i32_0 = arith.constant 0 : i32
    %c0_i32_1 = arith.constant 0 : i32
    return %c0_i32, %c0_i32_0 : i32, i32
  }
  func.func @transform_24(%arg0: i32, %arg1: i32) -> (i32, i32) {
    %c0_i32 = arith.constant 0 : i32
    %c0_i32_0 = arith.constant 0 : i32
    %c0_i32_1 = arith.constant 0 : i32
    return %c0_i32, %c0_i32_0 : i32, i32
  }
  func.func @transform_25(%arg0: i32, %arg1: i32) -> (i32, i32, i32) {
    %c0_i32 = arith.constant 0 : i32
    %c0_i32_0 = arith.constant 0 : i32
    return %arg0, %arg1, %c0_i32 : i32, i32, i32
  }
}

</mosaic_0001>

<bundles_post_ra>
// kernel: tpu_custom_call.1
= control target key start
LH: loop header
LB: loop body
LE: loop exit
PB: predicated region body
PF: predicated region fallthrough
CT: control target
= control target key end

     0   :  { %s6240_s0 = inlined_call_operand.hbm [shape: f32[2,8,32], index: 0, kind: input, shape index: {}]   ;;  %s6241_s1 = inlined_call_operand.hbm [shape: f32[2,8,32], index: 1, kind: input, shape index: {}]   ;;  %s6242_s2 = inlined_call_operand.hbm [shape: f32[8,8], index: 2, kind: input, shape index: {}]   ;;  %s6243_s3 = inlined_call_operand.vmem [shape: f32[32,32], index: 3, kind: input, shape index: {}]   ;;  %s6244_s4 = inlined_call_operand.vmem [shape: f32[1,32], index: 4, kind: input, shape index: {}]   ;;  %s6245_s5 = inlined_call_operand.vmem [shape: f32[32,64], index: 5, kind: input, shape index: {}]   ;;  %s6246_s6 = inlined_call_operand.vmem [shape: f32[1,64], index: 6, kind: input, shape index: {}]   ;;  %s6247_s7 = inlined_call_operand.vmem [shape: f32[4,8,32], index: 7, kind: input, shape index: {}]   ;;  %s6248_s8 = inlined_call_operand.vmem [shape: f32[1,32], index: 8, kind: input, shape index: {}]   ;;  %s6249_s9 = inlined_call_operand.hbm [shape: f32[32,32], index: 9, kind: input, shape index: {}]   ;;  %s6250_s10 = inlined_call_operand.vmem [shape: f32[1,32], index: 10, kind: input, shape index: {}]   ;;  %s6251_s11 = inlined_call_operand.hbm [shape: f32[32,64], index: 11, kind: input, shape index: {}]   ;;  %s6252_s12 = inlined_call_operand.vmem [shape: f32[1,64], index: 12, kind: input, shape index: {}]   ;;  %s6253_s13 = inlined_call_operand.hbm [shape: f32[4,8,32], index: 13, kind: input, shape index: {}]   ;;  %s6254_s14 = inlined_call_operand.vmem [shape: f32[1,32], index: 14, kind: input, shape index: {}]   ;;  %s6255_s15 = inlined_call_operand.hbm [shape: f32[32,64], index: 15, kind: input, shape index: {}]   ;;  %s6256_s16 = inlined_call_operand.vmem [shape: f32[1,64], index: 16, kind: input, shape index: {}]   ;;  %s6257_s17 = inlined_call_operand.vmem [shape: f32[64,32], index: 17, kind: input, shape index: {}]   ;;  %s6258_s18 = inlined_call_operand.vmem [shape: f32[1,32], index: 18, kind: input, shape index: {}]   ;;  %s6259_s19 = inlined_call_operand.vmem [shape: f32[1,32], index: 19, kind: input, shape index: {}]   ;;  %s6260_s20 = inlined_call_operand.vmem [shape: f32[1,32], index: 20, kind: input, shape index: {}]   ;;  %s6261_s21 = inlined_call_operand.vmem [shape: f32[1,32], index: 21, kind: input, shape index: {}]   ;;  %s6262_s22 = inlined_call_operand.vmem [shape: f32[1,32], index: 22, kind: input, shape index: {}]   ;;  %s6263_s23 = inlined_call_operand.vmem [shape: f32[1,32], index: 23, kind: input, shape index: {}]   ;;  %s6264_s24 = inlined_call_operand.vmem [shape: f32[1,32], index: 24, kind: input, shape index: {}]   ;;  %s6265_s25 = inlined_call_operand.hbm [shape: f32[2,8,32], index: 25, kind: output, shape index: {}]  }
   0x1   :  { %6277 = sst [smem:[#allocation32_spill]] %s6240_s0 }
   0x2   :  { %6278 = sst [smem:[#allocation33_spill]] %s6241_s1 }
   0x3   :  { %6279 = sst [smem:[#allocation34_spill]] %s6242_s2 }
   0x4   :  { %6280 = sst [smem:[#allocation35_spill]] %s6243_s3 }
   0x5   :  { %6281 = sst [smem:[#allocation36_spill]] %s6244_s4 }
   0x6   :  { %6282 = sst [smem:[#allocation37_spill]] %s6245_s5 }
   0x7   :  { %6283 = sst [smem:[#allocation38_spill]] %s6246_s6 }
   0x8   :  { %6284 = sst [smem:[#allocation39_spill]] %s6247_s7 }
   0x9   :  { %6285 = sst [smem:[#allocation40_spill]] %s6248_s8 }
   0xa   :  { %6286 = sst [smem:[#allocation41_spill]] %s6249_s9 }
   0xb   :  { %6287 = sst [smem:[#allocation42_spill]] %s6251_s11 }
   0xc   :  { %6288 = sst [smem:[#allocation43_spill]] %s6253_s13 }
   0xd   :  { %6289 = sst [smem:[#allocation44_spill]] %s6255_s15 }
   0xe   :  { %6290 = sst [smem:[#allocation45_spill]] %s6256_s16 }
   0xf   :  { %6291 = sst [smem:[#allocation46_spill]] %s6258_s18 }
  0x10   :  { %6292 = sst [smem:[#allocation47_spill]] %s6263_s23 }
  0x11   :  { %6293 = sst [smem:[#allocation48_spill]] %s6264_s24 }
  0x12   :  { %6294 = sst [smem:[#allocation49_spill]] %s6265_s25 }
  0x13   :  { %30 = vsyncpa [#allocation7], 0 }
  0x14   :  { %32 = vsyncpa [#allocation7 + $0x1], 0 }
  0x15   :  { %33 = vsyncpa [#allocation10], 0 }
  0x16   :  { %35 = vsyncpa [#allocation10 + $0x1], 0 }
  0x17   :  { %36 = vsyncpa [#allocation13], 0 }
  0x18   :  { %37 = vsyncpa [#allocation16], 0 }
  0x19   :  { %38 = vsyncpa [#allocation8], 0 }
  0x1a   :  { %40 = vsyncpa [#allocation8 + $0x1], 0  ;;  %s5495_s29 = smov 0   ;;  %s5497_s2 = smov 0  }
  0x1b   :  { %s5499_s6 = smov 0   ;;  %s5501_s30 = smov 0  }
  0x1c   :  { %s5503_s7 = smov 0   ;;  %s5505_s3 = smov 0  }
  0x1d LB: > { %6295 = sst [smem:[#allocation25_spill]] %s5325_s29  ;;  %s5526_s26 = sadd.s32 4294967295, %s5345_s3   ;;  %s5345_s3 = sphi %s5505_s3, %s46_s3   ;;  %s5341_s7 = sphi %s5503_s7, %s6343_s7   ;;  %s5337_s30 = sphi %s5501_s30, %s6342_s30   ;;  %s5333_s6 = sphi %s5499_s6, %s6341_s6   ;;  %s5329_s2 = sphi %s5497_s2, %s6345_s2   ;;  %s5325_s29 = sphi %s5495_s29, %s6344_s29  }
  0x1e   : > { %6296 = sst [smem:[#allocation26_spill]] %s5333_s6  ;;  %p4533_p0 = scmp.ge.s32.totalorder %s5345_s3, 1 }
  0x1f   : > { %6297 = sst [smem:[#allocation27_spill]] %s5337_s30  ;;  %p6270_p1 = scmp.eq.s32.totalorder %s5526_s26, 0 }
  0x20   : > { %6298 = sst [smem:[#allocation28_spill]] %s5341_s7  ;;  %p633_p2 = scmp.lt.s32.totalorder %s5345_s3, 3 }
  0x21   : > { %s5347_s8 = smov [#allocation11]   ;;  %s5348_s4 = smov [#allocation12]  }
  0x22   : > { %p5531_p3 = pnand %p4533_p0, %p633_p2  ;;  %s648_s27 = sshll.u32 %s5347_s8, 4  ;;  %s649_s27 = int_to_ptr.vmem [resolvable:$true] %s648_s27 }
  0x23   : > { %s676_s28 = sshll.u32 %s5348_s4, 4  ;;  %s5349_s5 = smov [#allocation15]   ;;  %s677_s28 = int_to_ptr.vmem [resolvable:$true] %s676_s28 }
  0x24   : > { %s6299_s1 = scalar_select %p5531_p3, 1, 0 }
  0x25   : > { %p4923_p5 = pneg %p5531_p3  ;;  %s708_s0 = sshll.u32 %s5349_s5, 4  ;;  %s709_s0 = int_to_ptr.vmem [resolvable:$true] %s708_s0 }
  0x26   : > { %s5074_s8 = scalar_lea.vmem %s649_s27, 128  ;;  %p5082_p11 = scmp.lt.s32.totalorder %s649_s27, %s649_s27 }
  0x27   : > { %p5540_p6 = pnand %p4923_p5, %p6270_p1  ;;  %p5075_p8 = scmp.ne.s32.totalorder %s649_s27, %s5074_s8 }
  0x28   : > { %p5083_p12 = scmp.lt.s32.totalorder %s5074_s8, %s5074_s8 }
  0x29   : > { %p5546_p7 = pneg %p5540_p6 }
  0x2a   : > { %p5084_p13 = por %p5083_p12, %p5082_p11 }
  0x2b   : > { %p5077_p9 = pnand %p5075_p8, %p5546_p7 }
  0x2d   : > { %p5078_p10 = pneg %p5077_p9 }
  0x2f   : > { %p5085_p0 = pnand %p5084_p13, %p5078_p10 }
  0x31   : > { %5088 = shalt.err (!%p5085_p0)
}
  0x32   : > { %s6302_s24 = sld [smem:[#allocation34_spill]]  ;;  %s5100_s23 = scalar_lea.vmem %s677_s28, 512 }
  0x33   : > { %p5101_p2 = scmp.ne.s32.totalorder %s677_s28, %s5100_s23  ;;  %p5108_p1 = scmp.lt.s32.totalorder %s677_s28, %s677_s28 }
  0x34   : > { %p5109_p8 = scmp.lt.s32.totalorder %s5100_s23, %s5100_s23 }
  0x35   : > { %p5103_p5 = pnand %p5101_p2, %p5546_p7 }
  0x36   : > { %p5110_p9 = por %p5109_p8, %p5108_p1 }
  0x37   : > { %p5104_p4 = pneg %p5103_p5 }
  0x38   : > { %4926 = dma.hbm_to_vmem [thread:$0]  (!%p5540_p6), %s6302_s24, 128, %s649_s27, [#allocation10]  }
  0x39   : > { %p5111_p3 = pnand %p5110_p9, %p5104_p4 }
  0x3b   : > { %5114 = shalt.err (!%p5111_p3)
}
  0x3c   : > { %s5350_s8 = smov 128   ;;  %s5351_s30 = smov 8  }
  0x3d   : > { %s6303_s27 = sld [smem:[#allocation41_spill]]  ;;  %s5126_s5 = scalar_lea.vmem %s709_s0, 512 }
  0x3e   : > { %p5127_p10 = scmp.ne.s32.totalorder %s709_s0, %s5126_s5  ;;  %p5134_p4 = scmp.lt.s32.totalorder %s709_s0, %s709_s0 }
  0x3f   : > { %p5135_p3 = scmp.lt.s32.totalorder %s5126_s5, %s5126_s5 }
  0x40   : > { %p5129_p11 = pnand %p5127_p10, %p5546_p7 }
  0x41   : > { %p5136_p12 = por %p5135_p3, %p5134_p4 }
  0x42   : > { %p5130_p1 = pneg %p5129_p11 }
  0x43   : > { %4929 = dma.hbm_to_vmem [thread:$0]  (!%p5540_p6), %s6303_s27, 512, %s677_s28, [#allocation13], %s5350_s8, %s5350_s8, %s5351_s30  }
  0x44   : > { %p5137_p13 = pnand %p5136_p12, %p5130_p1 }
  0x46   : > { %5140 = shalt.err (!%p5137_p13)
}
  0x47   : > { %s6304_s13 = sld [smem:[#allocation43_spill]]  ;;  %s5352_s28 = smov [#allocation14]  }
  0x48   : > { %s692_s4 = sshll.u32 %s5352_s28, 4  ;;  %s5353_s24 = smov [#allocation17]   ;;  %s693_s4 = int_to_ptr.vmem [resolvable:$true] %s692_s4 }
  0x49   : > { %s724_s27 = sshll.u32 %s5353_s24, 4  ;;  %s5152_s16 = scalar_lea.vmem %s693_s4, 512  ;;  %s725_s27 = int_to_ptr.vmem [resolvable:$true] %s724_s27 }
  0x4a   : > { %p5153_p0 = scmp.ne.s32.totalorder %s693_s4, %s5152_s16  ;;  %p5160_p8 = scmp.lt.s32.totalorder %s693_s4, %s693_s4 }
  0x4b   : > { %p5161_p9 = scmp.lt.s32.totalorder %s5152_s16, %s5152_s16 }
  0x4c   : > { %p5155_p2 = pnand %p5153_p0, %p5546_p7 }
  0x4d   : > { %4935 = dma.hbm_to_vmem [thread:$0]  (!%p5540_p6), %s6304_s13, 512, %s709_s0, [#allocation16], %s5350_s8, %s5350_s8, %s5351_s30  }
  0x4e   : > { %p5156_p5 = pneg %p5155_p2  ;;  %p5162_p10 = por %p5161_p9, %p5160_p8 }
  0x50   : > { %p5163_p11 = pnand %p5162_p10, %p5156_p5 }
  0x52   : > { %5166 = shalt.err (!%p5163_p11)
}
  0x53   : > { %s6305_s11 = sld [smem:[#allocation42_spill]]  ;;  %s5178_s5 = scalar_lea.vmem %s725_s27, 512 }
  0x54   : > { %p5179_p1 = scmp.ne.s32.totalorder %s725_s27, %s5178_s5  ;;  %p5186_p12 = scmp.lt.s32.totalorder %s725_s27, %s725_s27 }
  0x55   : > { %p5187_p13 = scmp.lt.s32.totalorder %s5178_s5, %s5178_s5 }
  0x56   : > { %p5181_p4 = pnand %p5179_p1, %p5546_p7 }
  0x57   : > { %p5188_p0 = por %p5187_p13, %p5186_p12 }
  0x58   : > { %p5182_p3 = pneg %p5181_p4 }
  0x59   : > { %4932 = dma.hbm_to_vmem [thread:$0]  (!%p5540_p6), %s6305_s11, 512, %s693_s4, [#allocation13], %s5350_s8, %s5350_s8, %s5351_s30  }
  0x5a   : > { %p5189_p2 = pnand %p5188_p0, %p5182_p3 }
  0x5c   : > { %5192 = shalt.err (!%p5189_p2)
}
  0x5d   : > { %s6306_s15 = sld [smem:[#allocation44_spill]]  ;;  %s4532_s25 = sadd.s32 4294967294, %s5345_s3  }
  0x5e   : > { %s58_s9 = sadd.s32 1, %s5341_s7  ;;  %s67_s28 = sadd.s32 1, %s5333_s6 }
  0x5f   : > { %p60_p7 = scmp.ge.s32.totalorder %s58_s9, 2  ;;  %p74_p5 = scmp.ne.s32.totalorder %s5333_s6, %s5329_s2 }
  0x60   : > { %p75_p8 = scmp.eq.s32.totalorder %s5345_s3, 0  ;;  %p80_p9 = scmp.ne.s32.totalorder %s5329_s2, %s5325_s29 }
  0x61   : > { %s6347_s9 = smov (%p60_p7, %s58_s9), 0  ;;  %p6309_p11 = scmp.eq.s32.totalorder %s5526_s26, 0 }
  0x62   : > { %6307 = sst [smem:[#allocation29_spill]] %s6347_s9  ;;  %p5607_p10 = por %p75_p8, %p74_p5 }
  0x63   : > { %4938 = dma.hbm_to_vmem [thread:$0]  (!%p5540_p6), %s6306_s15, 512, %s725_s27, [#allocation16], %s5350_s8, %s5350_s8, %s5351_s30  }
  0x64   : > { %p5613_p6 = por %p6309_p11, %p80_p9  ;;  %s62_s8 = ssub.s32 %s5341_s7, %s6347_s9 }
  0x65   : > { %p620_p1 = scmp.eq.s32.totalorder %s5526_s26, 1  ;;  %p65_p4 = scmp.eq.s32.totalorder %s62_s8, 0 }
  0x66   : > { %p626_p3 = scmp.eq.s32.totalorder %s4532_s25, 1  ;;  %p4955_p13 = scmp.lt.s32.totalorder %s5345_s3, 2 }
  0x67   : > { %p5620_p12 = por %p620_p1, %p74_p5  ;;  %s765_s0 = sand.u32 1, %s5333_s6  }
  0x68   : > { %s5626_s27 = scalar_select %p65_p4, %s5333_s6, %s67_s28  }
  0x69   : > { %p5628_p0 = por %p626_p3, %p80_p9  ;;  %s4540_s5 = sshll.u32 %s765_s0, 3 }
  0x6a   : > { %6312 = sst [smem:[#allocation30_spill]] %s5626_s27  ;;  %s4541_s16 = sshll.u32 %s5341_s7, 7 }
  0x6b   : > { %s6313_s18 = scalar_select %p5628_p0, 1, 0 }
  0x6c   : > { %s6315_s13 = sld [smem:[#allocation32_spill]]  ;;  %s769_s8 = scalar_lea.vmem [#allocation6], %s4540_s5 }
  0x6d   : > { %6314 = sst [smem:[#allocation31_spill]] %s6313_s18  ;;  %s777_s25 = sshll.u32 %s769_s8, 4  ;;  %s778_s25 = int_to_ptr.vmem [resolvable:$true] %s777_s25 }
  0x6e   : > { %p5639_p2 = pnand %p4955_p13, %p5607_p10  ;;  %s6317_s29 = sld [smem:[#allocation33_spill]] }
  0x6f   : > { %s784_s7 = sand.u32 1, %s5345_s3   ;;  %s766_s18 = scalar_lea.sflag [#allocation7], %s765_s0 }
  0x70   : > { %p5195_p7 = pneg %p5639_p2  ;;  %s5206_s11 = scalar_lea.vmem %s778_s25, 128 }
  0x71   : > { %p5207_p5 = scmp.ne.s32.totalorder %s778_s25, %s5206_s11 }
  0x72   : > { %s775_s15 = scalar_lea.hbm %s6315_s13, %s4541_s16  ;;  %s5354_s13 = smov [#allocation6]  }
  0x73   : > { %p5209_p8 = pnand %p5207_p5, %p5195_p7  ;;  %s5211_s4 = sshll.u32 %s5354_s13, 4  ;;  %s5212_s4 = int_to_ptr.vmem [resolvable:$false] %s5211_s4 }
  0x74   : > { %s5646_s6 = scalar_lea.hbm %s6317_s29, %s4541_s16  ;;  %s5213_s23 = scalar_lea.vmem %s5212_s4, 256 }
  0x75   : > { %p5210_p9 = pneg %p5209_p8  ;;  %p5214_p10 = scmp.lt.s32.totalorder %s778_s25, %s5212_s4 }
  0x76   : > { %p5215_p11 = scmp.lt.s32.totalorder %s5213_s23, %s5206_s11 }
  0x78   : > { %p5216_p1 = por %p5215_p11, %p5214_p10 }
  0x7a   : > { %p5217_p4 = pnand %p5216_p1, %p5210_p9 }
  0x7c   : > { %5220 = shalt.err (!%p5217_p4)
}
  0x7d   : > { %4942 = dma.hbm_to_vmem [thread:$0]  (!%p5639_p2), %s775_s15, 128, %s778_s25, %s766_s18  }
  0x7e   : > { %s788_s29 = scalar_lea.vmem [#allocation9], %s4540_s5  ;;  %s785_s0 = scalar_lea.sflag [#allocation10], %s784_s7 }
  0x7f   : > { %s795_s27 = sshll.u32 %s788_s29, 4  ;;  %s5355_s8 = smov [#allocation9]   ;;  %s796_s27 = int_to_ptr.vmem [resolvable:$true] %s795_s27 }
  0x80   : > { %s5234_s16 = scalar_lea.vmem %s796_s27, 128  ;;  %s5239_s28 = sshll.u32 %s5355_s8, 4  ;;  %s5240_s28 = int_to_ptr.vmem [resolvable:$false] %s5239_s28 }
  0x81   : > { %p5235_p3 = scmp.ne.s32.totalorder %s796_s27, %s5234_s16  ;;  %s5241_s11 = scalar_lea.vmem %s5240_s28, 256 }
  0x82   : > { %p5242_p8 = scmp.lt.s32.totalorder %s796_s27, %s5240_s28  ;;  %p5243_p9 = scmp.lt.s32.totalorder %s5241_s11, %s5234_s16 }
  0x83   : > { %p5237_p13 = pnand %p5235_p3, %p5195_p7 }
  0x84   : > { %p5244_p10 = por %p5243_p9, %p5242_p8 }
  0x85   : > { %p5238_p5 = pneg %p5237_p13 }
  0x87   : > { %p5245_p11 = pnand %p5244_p10, %p5238_p5 }
  0x89   : > { %5248 = shalt.err (!%p5245_p11)
}
  0x8a   : > { %4945 = dma.hbm_to_vmem [thread:$0]  (!%p5639_p2), %s5646_s6, 128, %s796_s27, %s785_s0  }
  0x8b   : > { %p6318_p1 = scmp.ne.s32.totalorder %s6299_s1, 0 }
  0x8c   : > { %s5665_s15 = sand.u32 (!%p6318_p1), 1, %s5329_s2  }
  0x8d   : > { %804 = sbr.rel (%p6318_p1) target bundleno = 4002 (0xfa2), region = 120  ;;  %s5668_s7 = sshll.u32 (!%p6318_p1), %s5665_s15, 3 }
  0x8e   : > { %s807_s18 = scalar_lea.sflag (!%p6318_p1), [#allocation7], %s5665_s15  ;;  %s810_s5 = scalar_lea.vmem (!%p6318_p1), [#allocation6], %s5668_s7 }
  0x92   : > { %5300 = dma.done.wait (%p5613_p6), %s807_s18, 128  }
  0x93   : > { %5302 = vsyncadd (%p5613_p6), %s807_s18, 4294967168  ;;  %s815_s6 = sand.u32 1, %s5526_s26   ;;  %s819_s9 = scalar_lea.vmem [#allocation9], %s5668_s7 }
  0x94   : > { %s816_s1 = scalar_lea.sflag [#allocation10], %s815_s6 }
  0x95   : > { %5304 = dma.done.wait (%p5613_p6), %s816_s1, 128  }
  0x96   : > { %5306 = vsyncadd (%p5613_p6), %s816_s1, 4294967168  ;;  %p6319_p2 = scmp.eq.s32.totalorder %s5526_s26, 0 }
  0x98   : > { %5308 = dma.done.wait (%p6319_p2), [#allocation10], 128   ;;  %p6320_p7 = pmov %p6319_p2 }
  0x99   : > { %p6321_p4 = pmov %p6319_p2 }
  0x9a   : > { %5310 = vsyncadd (%p6320_p7), [#allocation10], 4294967168 }
  0x9b   : > { %5312 = dma.done.wait (%p6321_p4), [#allocation13], 1024   ;;  %p6322_p3 = pmov %p6319_p2 }
  0x9c   : > { %p6323_p13 = pmov %p6319_p2 }
  0x9d   : > { %5314 = vsyncadd (%p6322_p3), [#allocation13], 4294966272 }
  0x9e   : > { %5316 = dma.done.wait (%p6323_p13), [#allocation16], 1024   ;;  %p6324_p5 = pmov %p6319_p2 }
  0x9f   : > { %v5356_v0 = vmov 0.0   ;;  %vm5357_vm0 = vmmov 0   ;;  %s6325_s13 = sld [smem:[#allocation37_spill]]  ;;  %v5714_v5 = vld [vmem:[%s810_s5] sm:$0xff]  ;;  %vm927_vm1 = vcmask 261120   ;;  %s5358_s26 = smov 104   ;;  %v1016_v25 = vlaneseq }
  0xa0   : > { %5318 = vsyncadd (%p6324_p5), [#allocation16], 4294966272  ;;  %4703 = vmatprep.subr.mxu0 %v5356_v0  ;;  %4711 = vmatprep.mubr.msk.f32.mxu0 %vm5357_vm0, %v5356_v0  ;;  %s6326_s28 = sld [smem:[#allocation35_spill]]  ;;  %s5359_s29 = smov 120   ;;  %v1308_v18 = vld [vmem:[#allocation14 + $0x18] sm:$0xff]  ;;  %v1307_v19 = vld [vmem:[#allocation14 + $0x10] sm:$0xff] }
  0xa1   : > { %4714 = vmatprep.subr.mxu1 %v5356_v0  ;;  %4722 = vmatprep.mubr.msk.f32.mxu1 %vm5357_vm0, %v5356_v0  ;;  %s6327_s23 = sld [smem:[#allocation38_spill]]  ;;  %s5360_s8 = smov 112   ;;  %v1306_v20 = vld [vmem:[#allocation14 + $0x8] sm:$0xff]  ;;  %v1305_v21 = vld [vmem:[#allocation14] sm:$0xff]  ;;  %v5361_v23 = vmov 1983009808  }
  0xa2   : > { %s6328_s16 = sld [smem:[#allocation36_spill]]  ;;  %4715 = vmatpush3.msra.mxu1 %v1308_v18  ;;  %v1304_v22 = vld [vmem:[%s819_s9] sm:$0xff]  ;;  %v1014_v24 = vunpack.c.l.s4 %v5361_v23  ;;  %v5362_v26 = vmov 1934713408   ;;  %v5774_v29 = vshrl.u32 %v1016_v25, 7  ;;  %vm1227_vm2 = vcmask 64512  }
  0xa3   : > { %4716 = vmatprep.subr.mxu1 %v5356_v0  ;;  %v1046_v27 = vunpack.c.l.s4 %v5362_v26  ;;  %s5363_s9 = smov 96   ;;  %s6329_s5 = sld [smem:[#allocation39_spill]]  ;;  %vm4259_vm4 = vcmask 523264  }
  0xa4   : > { %4717 = vmatpush3.msra.mxu1 %v1307_v19  ;;  %v1015_v28 = vunpack.c.0.s8 %v1014_v24  ;;  %s6331_s6 = sld [smem:[#allocation45_spill]] }
  0xa5   : > { %v919_v1 = vld [vmem:[%s6325_s13 + $0x18] sm:$0xff]  ;;  %v918_v2 = vld [vmem:[%s6325_s13 + $0x10] sm:$0xff]  ;;  %v917_v3 = vld [vmem:[%s6325_s13 + $0x8] sm:$0xff]  ;;  %4718 = vmatprep.subr.mxu1 %v5356_v0  ;;  %v1047_v32 = vunpack.c.0.s8 %v1046_v27  ;;  %s6332_s25 = sld [smem:[#allocation46_spill]] }
  0xa6   : > { %4704 = vmatpush3.msra.mxu0 %v919_v1  ;;  %v916_v4 = vld [vmem:[%s6325_s13] sm:$0xff]  ;;  %v1713_v6 = vld [vmem:[%s6326_s28 + $0x18] sm:$0xff]  ;;  %v1712_v7 = vld [vmem:[%s6326_s28 + $0x10] sm:$0xff]  ;;  %4719 = vmatpush3.msra.mxu1 %v1306_v20  ;;  %v5781_v33 = vsub.s32 %v1015_v28, %v5774_v29  ;;  %s6333_s4 = sld [smem:[#allocation27_spill]] }
  0xa7   : > { %4705 = vmatprep.subr.mxu0 %v5356_v0  ;;  %v1711_v8 = vld [vmem:[%s6326_s28 + $0x8] sm:$0xff]  ;;  %v1710_v9 = vld [vmem:[%s6326_s28] sm:$0xff]  ;;  %4720 = vmatprep.subr.mxu1 %v5356_v0  ;;  %v5794_v39 = vsub.s32 %v1047_v32, %v5774_v29  ;;  %s6335_s27 = sld [smem:[#allocation48_spill]] }
  0xa8   : > { %4706 = vmatpush3.msra.mxu0 %v918_v2  ;;  %v4553_v10 = vld [vmem:[%s6327_s23] ss:$0 sm:$0xff]  ;;  %4721 = vmatpush3.msra.mxu1 %v1305_v21  ;;  %s6336_s1 = sld [smem:[#allocation49_spill]] }
  0xa9   : > { %4707 = vmatprep.subr.mxu0 %v5356_v0  ;;  %v4565_v14 = vld [vmem:[%s6328_s16] ss:$0 sm:$0xff]  ;;  %4723 = vmatmul.mubr.msk.f32.vlgmr.msra.gmra.mxu1 %vm927_vm1, %v1304_v22  ;;  %s6330_s16 = sld [smem:[#allocation40_spill]] }
  0xaa   : > { %4708 = vmatpush3.msra.mxu0 %v917_v3  ;;  %4741 = vmatprep.subr.mxu1 %v5356_v0 }
  0xab   : > { %4709 = vmatprep.subr.mxu0 %v5356_v0  ;;  %4743 = vmatprep.mubr.msk.f32.mxu1 %vm5357_vm0, %v5356_v0 }
  0xac   : > { %4710 = vmatpush3.msra.mxu0 %v916_v4  ;;  %s4618_s0 = sshll.u32 %s6333_s4, 7 }
  0xad   : > { %4712 = vmatmul.mubr.msk.f32.vlgmr.msra.gmra.mxu0 %vm927_vm1, %v5714_v5  ;;  %4725 = vmatprep.subr.mxu0 %v5356_v0 }
  0xae   : > { %4726 = vmatpush3.msra.mxu0 %v1713_v6  ;;  %4733 = vmatprep.mubr.msk.f32.mxu0 %vm5357_vm0, %v5356_v0  ;;  %s4377_s30 = scalar_lea.hbm %s6336_s1, %s4618_s0 }
  0xaf   : > { %4727 = vmatprep.subr.mxu0 %v5356_v0 }
  0xb0   : > { %4728 = vmatpush3.msra.mxu0 %v1712_v7 }
  0xb1   : > { %4729 = vmatprep.subr.mxu0 %v5356_v0 }
  0xb2   : > { %4730 = vmatpush3.msra.mxu0 %v1711_v8 }
  0xb3   : > { %4731 = vmatprep.subr.mxu0 %v5356_v0 }
  0xb4   : > { %4732 = vmatpush3.msra.mxu0 %v1710_v9 }
  0xb5   : > { %4734 = vmatmul.mubr.msk.f32.vlgmr.msra.gmra.mxu0 %vm927_vm1, %v5714_v5  ;;  %4736 = vmatprep.subr.mxu0 %v5356_v0 }
  0xb6   : > { %4738 = vmatprep.mubr.msk.f32.mxu0 %vm5357_vm0, %v5356_v0 }
 0x16d   : > { %v997_v11 = vpop.f32.mrf.mxu0 }
 0x16e   : > { %v5745_v12 = vadd.f32 %v4553_v10, %v997_v11 }
 0x16f   : > { %v4713_v13 = vpop.f32.mrf.mxu0 }
 0x170   : > { %1008 = vrot.lane.b32.xlu1 %v5745_v12, %s5358_s26  ;;  %1002 = vrot.lane.b32.xlu0 %v5745_v12, %s5359_s29 }
 0x174   : > { %1005 = vrot.lane.b32.xlu0 %v5745_v12, %s5360_s8 }
 0x175   : > { %v1796_v15 = vpop.f32.mrf.mxu0 }
 0x176   : > { %v5756_v16 = vadd.f32 %v4565_v14, %v1796_v15 }
 0x177   : > { %v4735_v17 = vpop.f32.mrf.mxu0 }
 0x178   : > { %1804 = vrot.lane.b32.xlu0 %v5756_v16, %s5360_s8  ;;  %1801 = vrot.lane.b32.xlu1 %v5756_v16, %s5359_s29 }
 0x17c   : > { %1807 = vrot.lane.b32.xlu1 %v5756_v16, %s5358_s26 }
 0x1e2   : > { %v5776_v30 = vpop.permute.xlu1 %1008  ;;  %v5778_v31 = vpop.permute.xlu0 %1002 }
 0x1e3   : > { %v1027_v34 = vcombine.low %v5778_v31, %v5776_v30  ;;  %v1028_v35 = vcombine.high %v5778_v31, %v5776_v30 }
 0x1e5   : > { %v1035_v40 = vrot.slane %v1027_v34, %v5781_v33  ;;  %v1042_v41 = vrot.slane %v1028_v35, %v5781_v33 }
 0x1e6   : > { %v5787_v36 = vpop.permute.xlu0 %1005 }
 0x1e7   : > { %v1011_v37 = vcombine.low %v5745_v12, %v5787_v36  ;;  %v1012_v38 = vcombine.high %v5745_v12, %v5787_v36 }
 0x1e9   : > { %v1019_v42 = vrot.slane %v1011_v37, %v5781_v33  ;;  %v1026_v43 = vrot.slane %v1012_v38, %v5781_v33 }
 0x1ea   : > { %v1802_v44 = vpop.permute.xlu1 %1801  ;;  %v1805_v49 = vpop.permute.xlu0 %1804 }
 0x1eb   : > { %v1043_v45 = vcombine.low %v1019_v42, %v1035_v40  ;;  %v1044_v46 = vcombine.high %v1019_v42, %v1035_v40  ;;  %v1059_v47 = vcombine.low %v1026_v43, %v1042_v41  ;;  %v1060_v48 = vcombine.high %v1026_v43, %v1042_v41 }
 0x1ec   : > { %v1810_v54 = vcombine.low %v5756_v16, %v1805_v49  ;;  %v1811_v55 = vcombine.high %v5756_v16, %v1805_v49 }
 0x1ed   : > { %v1051_v50 = vrot.slane %v1043_v45, %v5794_v39  ;;  %v1058_v51 = vrot.slane %v1044_v46, %v5794_v39  ;;  %v1067_v52 = vrot.slane %v1059_v47, %v5794_v39  ;;  %v1074_v53 = vrot.slane %v1060_v48, %v5794_v39 }
 0x1ee   : > { %v1808_v56 = vpop.permute.xlu1 %1807  ;;  %v1818_v4 = vrot.slane %v1810_v54, %v5781_v33  ;;  %v1825_v6 = vrot.slane %v1811_v55, %v5781_v33 }
 0x1ef   : > { %v1159_v57 = vcombine.low %v1051_v50, %v1058_v51  ;;  %v4555_v58 = vcombine.high %v1051_v50, %v1058_v51  ;;  %v1175_v59 = vcombine.low %v1067_v52, %v1074_v53  ;;  %v4556_v60 = vcombine.high %v1067_v52, %v1074_v53 }
 0x1f0   : > { %v1826_v61 = vcombine.low %v1802_v44, %v1808_v56  ;;  %v1827_v62 = vcombine.high %v1802_v44, %v1808_v56 }
 0x1f1   : > { %v1166_v63 = vrot.slane %v1159_v57, %v5781_v33  ;;  %v1174_v1 = vrot.slane %v4555_v58, %v5781_v33  ;;  %v1182_v2 = vrot.slane %v1175_v59, %v5781_v33  ;;  %v1190_v3 = vrot.slane %v4556_v60, %v5781_v33 }
 0x1f2   : > { %v1834_v7 = vrot.slane %v1826_v61, %v5781_v33  ;;  %v1841_v8 = vrot.slane %v1827_v62, %v5781_v33  ;;  %v5854_v61 = vpop.f32.mrf.mxu1 }
 0x1f3   : > { %v1191_v9 = vcombine.low %v1166_v63, %v1174_v1  ;;  %v1192_v10 = vcombine.high %v1166_v63, %v1174_v1  ;;  %v1207_v11 = vcombine.low %v1182_v2, %v1190_v3  ;;  %v1208_v13 = vcombine.high %v1182_v2, %v1190_v3 }
 0x1f4   : > { %v1842_v14 = vcombine.low %v1818_v4, %v1834_v7  ;;  %v1843_v15 = vcombine.high %v1818_v4, %v1834_v7  ;;  %v1858_v16 = vcombine.low %v1825_v6, %v1841_v8  ;;  %v1859_v17 = vcombine.high %v1825_v6, %v1841_v8  ;;  %v4724_v62 = vpop.f32.mrf.mxu1 }
 0x1f5   : > { %v1199_v18 = vrot.slane %v1191_v9, %v5794_v39  ;;  %v1206_v19 = vrot.slane %v1192_v10, %v5794_v39  ;;  %v1215_v20 = vrot.slane %v1207_v11, %v5794_v39  ;;  %v1222_v21 = vrot.slane %v1208_v13, %v5794_v39 }
 0x1f6   : > { %v1850_v22 = vrot.slane %v1842_v14, %v5794_v39  ;;  %v1857_v23 = vrot.slane %v1843_v15, %v5794_v39  ;;  %v1866_v24 = vrot.slane %v1858_v16, %v5794_v39  ;;  %v1873_v26 = vrot.slane %v1859_v17, %v5794_v39 }
 0x1f7   : > { %v1223_v27 = vcombine.low %v1199_v18, %v1215_v20  ;;  %v1224_v28 = vcombine.high %v1199_v18, %v1215_v20  ;;  %v1225_v32 = vcombine.low %v1206_v19, %v1222_v21  ;;  %v1226_v34 = vcombine.high %v1206_v19, %v1222_v21 }
 0x1f8   : > { %v1878_v35 = vcombine.low %v1850_v22, %v1857_v23  ;;  %v4567_v37 = vcombine.high %v1850_v22, %v1857_v23  ;;  %v1894_v38 = vcombine.low %v1866_v24, %v1873_v26  ;;  %v4568_v40 = vcombine.high %v1866_v24, %v1873_v26 }
 0x1f9   : > { %1228 = vst.msk [vmem:[#allocation2] sm:$0xff] %vm1227_vm2, %v1223_v27  ;;  %1229 = vst.msk [vmem:[#allocation2 + $0x8] sm:$0xff] %vm1227_vm2, %v1224_v28  ;;  %v1698_v63 = vand.u32 127, %v1016_v25 }
 0x1fa   : > { %1230 = vst.msk [vmem:[#allocation2 + $0x10] sm:$0xff] %vm1227_vm2, %v1225_v32  ;;  %1231 = vst.msk [vmem:[#allocation2 + $0x18] sm:$0xff] %vm1227_vm2, %v1226_v34  ;;  %v1885_v41 = vrot.slane %v1878_v35, %v5781_v33  ;;  %v1893_v42 = vrot.slane %v4567_v37, %v5781_v33  ;;  %v1901_v43 = vrot.slane %v1894_v38, %v5781_v33 }
 0x1fb   : > { %v1909_v44 = vrot.slane %v4568_v40, %v5781_v33  ;;  %vm1699_vm3 = vcmp.gt.s32.totalorder %v1698_v63, %v5774_v29 }
 0x1fc   : > { %v1910_v45 = vcombine.low %v1885_v41, %v1893_v42  ;;  %v1911_v47 = vcombine.high %v1885_v41, %v1893_v42  ;;  %v1700_v3 = vsel %vm1699_vm3, -1e+09, %v5356_v0 }
 0x1fd   : > { %v1926_v46 = vcombine.low %v1901_v43, %v1909_v44  ;;  %v1927_v48 = vcombine.high %v1901_v43, %v1909_v44 }
 0x1fe   : > { %v1918_v49 = vrot.slane %v1910_v45, %v5794_v39  ;;  %v1925_v53 = vrot.slane %v1911_v47, %v5794_v39 }
 0x1ff   : > { %v1934_v50 = vrot.slane %v1926_v46, %v5794_v39  ;;  %v1941_v56 = vrot.slane %v1927_v48, %v5794_v39 }
 0x200   : > { %v1702_v51 = vld [vmem:[#allocation2] sm:$0xff]  ;;  %v1703_v52 = vld [vmem:[#allocation2 + $0x8] sm:$0xff] }
 0x201   : > { %4737 = vmatpush3.xpose.msk.msra.mxu0 %vm1227_vm2, %v1702_v51  ;;  %4742 = vmatpush3.xpose.msk.msra.mxu1 %vm1227_vm2, %v1703_v52  ;;  %v1942_v54 = vcombine.low %v1918_v49, %v1934_v50  ;;  %v1943_v55 = vcombine.high %v1918_v49, %v1934_v50  ;;  %v1704_v57 = vld [vmem:[#allocation2 + $0x10] sm:$0xff]  ;;  %v1705_v58 = vld [vmem:[#allocation2 + $0x18] sm:$0xff]  ;;  %v1944_v59 = vcombine.low %v1925_v53, %v1941_v56 }
 0x202   : > { %4746 = vmatprep.subr.mxu0 %v5356_v0  ;;  %4751 = vmatprep.subr.mxu1 %v5356_v0  ;;  %v1945_v60 = vcombine.high %v1925_v53, %v1941_v56 }
 0x204   : > { %4739 = vmatmul.mubr.msk.f32.vlgmr.msra.gmra.mxu0 %vm1227_vm2, %v1942_v54  ;;  %4744 = vmatmul.mubr.msk.f32.vlgmr.msra.gmra.mxu1 %vm1227_vm2, %v1943_v55 }
 0x205   : > { %4747 = vmatpush3.xpose.msk.msra.mxu0 %vm1227_vm2, %v1704_v57  ;;  %4752 = vmatpush3.xpose.msk.msra.mxu1 %vm1227_vm2, %v1705_v58 }
 0x206   : > { %4748 = vmatprep.mubr.msk.f32.mxu0 %vm5357_vm0, %v5356_v0  ;;  %4753 = vmatprep.mubr.msk.f32.mxu1 %vm5357_vm0, %v5356_v0 }
 0x207   : > { %4756 = vmatprep.subr.mxu0 %v5356_v0  ;;  %4761 = vmatprep.subr.mxu1 %v5356_v0 }
 0x208   : > { %4749 = vmatmul.mubr.msk.f32.vlgmr.msra.gmra.mxu0 %vm1227_vm2, %v1944_v59  ;;  %4754 = vmatmul.mubr.msk.f32.vlgmr.msra.gmra.mxu1 %vm1227_vm2, %v1945_v60 }
 0x209   : > { %4758 = vmatprep.mubr.msk.f32.mxu0 %vm5357_vm0, %v5356_v0  ;;  %4763 = vmatprep.mubr.msk.f32.mxu1 %vm5357_vm0, %v5356_v0 }
 0x2c4   : > { %v2019_v1 = vpop.f32.mrf.mxu0  ;;  %v2095_v2 = vpop.f32.mrf.mxu1 }
 0x2c5   : > { %v2251_v4 = vmul.f32 0.35355338, %v2019_v1  ;;  %v2252_v6 = vmul.f32 0.35355338, %v2095_v2 }
 0x2c6   : > { %v4740_v7 = vpop.f32.mrf.mxu0  ;;  %v4745_v8 = vpop.f32.mrf.mxu1 }
 0x2c7   : > { %v2256_v9 = vadd.f32 %v2252_v6, %v1700_v3  ;;  %v2255_v10 = vadd.f32 %v2251_v4, %v1700_v3 }
 0x2c8   : > { %v2171_v11 = vpop.f32.mrf.mxu0  ;;  %v2247_v13 = vpop.f32.mrf.mxu1 }
 0x2c9   : > { %v2253_v14 = vmul.f32 0.35355338, %v2171_v11  ;;  %v2254_v15 = vmul.f32 0.35355338, %v2247_v13  ;;  %v2262_v16 = vsel %vm1227_vm2, %v2256_v9, -inf  ;;  %v2259_v25 = vsel %vm1227_vm2, %v2255_v10, -inf }
 0x2ca   : > { %2263 = vmax.xlane.f32.xlu1 %v2262_v16  ;;  %v4755_v29 = vpop.f32.mrf.mxu1  ;;  %2260 = vmax.xlane.f32.xlu0 %v2259_v25  ;;  %v4750_v17 = vpop.f32.mrf.mxu0 }
 0x2cb   : > { %v2257_v18 = vadd.f32 %v2253_v14, %v1700_v3  ;;  %v2258_v20 = vadd.f32 %v2254_v15, %v1700_v3 }
 0x2cd   : > { %v2265_v19 = vsel %vm1227_vm2, %v2257_v18, -inf  ;;  %v2268_v21 = vsel %vm1227_vm2, %v2258_v20, -inf }
 0x2ce   : > { %2266 = vmax.xlane.f32.xlu0 %v2265_v19 }
 0x2d2   : > { %2269 = vmax.xlane.f32.xlu0 %v2268_v21 }
 0x2db   : > { %1081 = vrot.lane.b32.xlu1 %v5778_v31, %s5363_s9 }
 0x2df   : > { %1083 = vrot.lane.b32.xlu1 %v5787_v36, %s5363_s9 }
 0x2e8   : > { %1079 = vrot.lane.b32.xlu0 %v5745_v12, %s5363_s9 }
 0x2ec   : > { %1085 = vrot.lane.b32.xlu0 %v5776_v30, %s5363_s9 }
 0x353   : > { %v2264_v22 = vpop.xlane.xlu1 %2263  ;;  %v2261_v23 = vpop.xlane.xlu0 %2260 }
 0x354   : > { %v2272_v24 = vsub.f32 %v2256_v9, %v2264_v22  ;;  %v2271_v26 = vsub.f32 %v2255_v10, %v2261_v23 }
 0x356   : > { %v2275_v27 = vmul.f32 1.442695, %v2271_v26  ;;  %v2277_v28 = vmul.f32 1.442695, %v2272_v24 }
 0x357   : > { %v2267_v32 = vpop.xlane.xlu0 %2266  ;;  %v1082_v31 = vpop.permute.xlu1 %1081 }
 0x358   : > { %v2273_v34 = vsub.f32 %v2257_v18, %v2267_v32  ;;  %5025 = vpow2.f32 %v2275_v27 }
 0x359   : > { %5027 = vpow2.f32 %v2277_v28 }
 0x35a   : > { %v2279_v35 = vmul.f32 1.442695, %v2273_v34 }
 0x35b   : > { %v2270_v37 = vpop.xlane.xlu0 %2269  ;;  %v1084_v40 = vpop.permute.xlu1 %1083 }
 0x35c   : > { %5029 = vpow2.f32 %v2279_v35  ;;  %v2274_v36 = vsub.f32 %v2258_v20, %v2270_v37 }
 0x35e   : > { %v2281_v38 = vmul.f32 1.442695, %v2274_v36 }
 0x35f   : > { %v1080_v12 = vpop.permute.xlu0 %1079 }
 0x360   : > { %5031 = vpow2.f32 %v2281_v38  ;;  %v1091_v30 = vcombine.low %v1080_v12, %v1084_v40  ;;  %v1092_v41 = vcombine.high %v1080_v12, %v1084_v40 }
 0x362   : > { %v1099_v46 = vrot.slane %v1091_v30, %v5781_v33  ;;  %v1106_v47 = vrot.slane %v1092_v41, %v5781_v33 }
 0x363   : > { %v1086_v42 = vpop.permute.xlu0 %1085 }
 0x364   : > { %v1107_v43 = vcombine.low %v1082_v31, %v1086_v42  ;;  %v1108_v44 = vcombine.high %v1082_v31, %v1086_v42  ;;  %v1715_v42 = vld [vmem:[%s6329_s5] sm:$0xff] }
 0x365   : > { %v5871_v45 = vpop.eup %5025 }
 0x366   : > { %v1115_v48 = vrot.slane %v1107_v43, %v5781_v33  ;;  %v1122_v49 = vrot.slane %v1108_v44, %v5781_v33  ;;  %v2283_v50 = vsel %vm1227_vm2, %v5871_v45, 0.0  ;;  %v5879_v51 = vpop.eup %5027  ;;  %v1716_v43 = vld [vmem:[%s6329_s5 + $0x8] sm:$0xff]  ;;  %v1717_v44 = vld [vmem:[%s6329_s5 + $0x10] sm:$0xff] }
 0x367   : > { %2284 = vadd.xlane.f32.xlu1 %v2283_v50  ;;  %v2286_v62 = vsel %vm1227_vm2, %v5879_v51, 0.0 }
 0x368   : > { %v1123_v52 = vcombine.low %v1099_v46, %v1115_v48  ;;  %v1124_v53 = vcombine.high %v1099_v46, %v1115_v48  ;;  %v1139_v54 = vcombine.low %v1106_v47, %v1122_v49  ;;  %v1140_v55 = vcombine.high %v1106_v47, %v1122_v49  ;;  %v1718_v47 = vld [vmem:[%s6329_s5 + $0x18] sm:$0xff] }
 0x369   : > { %v5030_v56 = vpop.eup %5029 }
 0x36a   : > { %v1131_v57 = vrot.slane %v1123_v52, %v5794_v39  ;;  %v1138_v58 = vrot.slane %v1124_v53, %v5794_v39  ;;  %v1147_v59 = vrot.slane %v1139_v54, %v5794_v39  ;;  %v1154_v60 = vrot.slane %v1140_v55, %v5794_v39 }
 0x36b   : > { %v2289_v63 = vsel %vm1227_vm2, %v5030_v56, 0.0  ;;  %2287 = vadd.xlane.f32.xlu1 %v2286_v62 }
 0x36c   : > { %v1232_v1 = vcombine.low %v1131_v57, %v1138_v58  ;;  %v4557_v2 = vcombine.high %v1131_v57, %v1138_v58  ;;  %v1248_v3 = vcombine.low %v1147_v59, %v1154_v60  ;;  %v4558_v4 = vcombine.high %v1147_v59, %v1154_v60  ;;  %2290 = vadd.xlane.f32.xlu0 %v2289_v63 }
 0x36d   : > { %v5032_v6 = vpop.eup %5031 }
 0x36e   : > { %v1239_v7 = vrot.slane %v1232_v1, %v5781_v33  ;;  %v1247_v8 = vrot.slane %v4557_v2, %v5781_v33  ;;  %v1255_v9 = vrot.slane %v1248_v3, %v5781_v33  ;;  %v1263_v10 = vrot.slane %v4558_v4, %v5781_v33  ;;  %v4585_v4 = vld [vmem:[%s6330_s16] ss:$0 sm:$0xff]  ;;  %s910_s16 = scalar_lea.vmem [#allocation18], %s5668_s7 }
 0x36f   : > { %v2292_v11 = vsel %vm1227_vm2, %v5032_v6, 0.0  ;;  %s4379_s11 = sshll.u32 %s910_s16, 4  ;;  %s4380_s11 = int_to_ptr.vmem [resolvable:$true] %s4379_s11 }
 0x370   : > { %v1264_v13 = vcombine.low %v1239_v7, %v1247_v8  ;;  %v1265_v14 = vcombine.high %v1239_v7, %v1247_v8  ;;  %v1280_v15 = vcombine.low %v1255_v9, %v1263_v10  ;;  %v1281_v16 = vcombine.high %v1255_v9, %v1263_v10  ;;  %2293 = vadd.xlane.f32.xlu0 %v2292_v11  ;;  %s5249_s23 = scalar_lea.vmem %s4380_s11, 128 }
 0x371   : > { %p5250_p6 = scmp.ne.s32.totalorder %s4380_s11, %s5249_s23 }
 0x372   : > { %v1272_v25 = vrot.slane %v1264_v13, %v5794_v39  ;;  %v1279_v29 = vrot.slane %v1265_v14, %v5794_v39  ;;  %v1288_v17 = vrot.slane %v1280_v15, %v5794_v39  ;;  %v1295_v18 = vrot.slane %v1281_v16, %v5794_v39  ;;  %v4559_v13 = vld [vmem:[%s6252_s12] ss:$0 sm:$0xff] }
 0x373   : > { %v5960_v14 = vadd.f32 %v4559_v13, %v5854_v61  ;;  %v2942_v61 = vld [vmem:[#allocation12 + $0x10] sm:$0xff]  ;;  %v4588_v13 = vld [vmem:[%s6250_s10] ss:$0 sm:$0xff]  ;;  %p5251_p8 = pnand %p5250_p6, %p5620_p12 }
 0x374   : > { %v1296_v19 = vcombine.low %v1272_v25, %v1288_v17  ;;  %v1297_v20 = vcombine.high %v1272_v25, %v1288_v17  ;;  %v1298_v21 = vcombine.low %v1279_v29, %v1295_v18  ;;  %v1299_v22 = vcombine.high %v1279_v29, %v1295_v18  ;;  %v2943_v17 = vld [vmem:[#allocation12 + $0x18] sm:$0xff]  ;;  %v2941_v18 = vld [vmem:[#allocation12 + $0x8] sm:$0xff] }
 0x375   : > { %p5252_p9 = pneg %p5251_p8 }
 0x376   : > { %1300 = vst.msk [vmem:[#allocation3] sm:$0xff] %vm1227_vm2, %v1296_v19  ;;  %1301 = vst.msk [vmem:[#allocation3 + $0x8] sm:$0xff] %vm1227_vm2, %v1297_v20  ;;  %v2940_v19 = vld [vmem:[#allocation12] sm:$0xff] }
 0x377   : > { %1302 = vst.msk [vmem:[#allocation3 + $0x10] sm:$0xff] %vm1227_vm2, %v1298_v21  ;;  %1303 = vst.msk [vmem:[#allocation3 + $0x18] sm:$0xff] %vm1227_vm2, %v1299_v22 }
 0x37d   : > { %v1706_v23 = vld [vmem:[#allocation3] sm:$0xff]  ;;  %v1707_v24 = vld [vmem:[#allocation3 + $0x8] sm:$0xff] }
 0x37e   : > { %4757 = vmatpush3.msra.mxu0 %v1706_v23  ;;  %4762 = vmatpush3.msra.mxu1 %v1707_v24  ;;  %v1708_v31 = vld [vmem:[#allocation3 + $0x10] sm:$0xff]  ;;  %v1709_v40 = vld [vmem:[#allocation3 + $0x18] sm:$0xff] }
 0x37f   : > { %4766 = vmatprep.subr.mxu0 %v5356_v0  ;;  %4771 = vmatprep.subr.mxu1 %v5356_v0 }
 0x3f0   : > { %v2285_v26 = vpop.xlane.xlu1 %2284 }
 0x3f1   : > { %5033 = vrcp.f32 %v2285_v26 }
 0x3f4   : > { %v2288_v27 = vpop.xlane.xlu1 %2287 }
 0x3f5   : > { %5035 = vrcp.f32 %v2288_v27  ;;  %v2291_v28 = vpop.xlane.xlu0 %2290 }
 0x3f6   : > { %5037 = vrcp.f32 %v2291_v28 }
 0x3f9   : > { %v2294_v32 = vpop.xlane.xlu0 %2293 }
 0x3fa   : > { %5039 = vrcp.f32 %v2294_v32 }
 0x3fe   : > { %v5034_v34 = vpop.eup %5033 }
 0x3ff   : > { %v2299_v35 = vmul.f32 %v5034_v34, %v5871_v45 }
 0x401   : > { %4759 = vmatmul.mubr.msk.f32.vlgmr.msra.gmra.mxu0 %vm1227_vm2, %v2299_v35 }
 0x402   : > { %v5036_v37 = vpop.eup %5035  ;;  %4767 = vmatpush3.msra.mxu0 %v1708_v31  ;;  %4768 = vmatprep.mubr.msk.f32.mxu0 %vm5357_vm0, %v5356_v0 }
 0x403   : > { %v5038_v36 = vpop.eup %5037  ;;  %v2300_v38 = vmul.f32 %v5036_v37, %v5879_v51  ;;  %4776 = vmatprep.subr.mxu0 %v5356_v0 }
 0x404   : > { %v2301_v12 = vmul.f32 %v5038_v36, %v5030_v56 }
 0x405   : > { %4764 = vmatmul.mubr.msk.f32.vlgmr.msra.gmra.mxu1 %vm1227_vm2, %v2300_v38 }
 0x406   : > { %4769 = vmatmul.mubr.msk.f32.vlgmr.msra.gmra.mxu0 %vm1227_vm2, %v2301_v12  ;;  %4772 = vmatpush3.msra.mxu1 %v1709_v40 }
 0x407   : > { %v5040_v30 = vpop.eup %5039  ;;  %4773 = vmatprep.mubr.msk.f32.mxu1 %vm5357_vm0, %v5356_v0  ;;  %4778 = vmatprep.mubr.msk.f32.mxu0 %vm5357_vm0, %v5356_v0 }
 0x408   : > { %v2302_v41 = vmul.f32 %v5040_v30, %v5032_v6  ;;  %4781 = vmatprep.subr.mxu1 %v5356_v0  ;;  %4777 = vmatpush3.msra.mxu0 %v1715_v42 }
 0x409   : > { %4786 = vmatprep.subr.mxu0 %v5356_v0 }
 0x40a   : > { %4774 = vmatmul.mubr.msk.f32.vlgmr.msra.gmra.mxu1 %vm1227_vm2, %v2302_v41 }
 0x40b   : > { %4783 = vmatprep.mubr.msk.f32.mxu1 %vm5357_vm0, %v5356_v0  ;;  %4782 = vmatpush3.msra.mxu1 %v1716_v43 }
 0x40c   : > { %4791 = vmatprep.subr.mxu1 %v5356_v0 }
 0x4c1   : > { %v2372_v45 = vpop.f32.mrf.mxu0 }
 0x4c2   : > { %4779 = vmatmul.mubr.msk.f32.vlgmr.msra.gmra.mxu0 %vm1227_vm2, %v2372_v45 }
 0x4c3   : > { %v4760_v46 = vpop.f32.mrf.mxu0  ;;  %4787 = vmatpush3.msra.mxu0 %v1717_v44  ;;  %4788 = vmatprep.mubr.msk.f32.mxu0 %vm5357_vm0, %v5356_v0 }
 0x4c4   : > { %4796 = vmatprep.subr.mxu0 %v5356_v0 }
 0x4c5   : > { %v2445_v48 = vpop.f32.mrf.mxu1 }
 0x4c6   : > { %v2518_v49 = vpop.f32.mrf.mxu0  ;;  %4784 = vmatmul.mubr.msk.f32.vlgmr.msra.gmra.mxu1 %vm1227_vm2, %v2445_v48 }
 0x4c7   : > { %4789 = vmatmul.mubr.msk.f32.vlgmr.msra.gmra.mxu0 %vm1227_vm2, %v2518_v49  ;;  %v4765_v50 = vpop.f32.mrf.mxu1  ;;  %4792 = vmatpush3.msra.mxu1 %v1718_v47 }
 0x4c8   : > { %v4770_v51 = vpop.f32.mrf.mxu0  ;;  %4793 = vmatprep.mubr.msk.f32.mxu1 %vm5357_vm0, %v5356_v0  ;;  %4804 = vmatprep.mubr.msk.f32.mxu0 %vm5357_vm0, %v5356_v0 }
 0x4c9   : > { %4807 = vmatprep.subr.mxu1 %v5356_v0  ;;  %4797 = vmatpush3.msra.mxu0 %v2943_v17 }
 0x4ca   : > { %v2591_v52 = vpop.f32.mrf.mxu1  ;;  %4798 = vmatprep.subr.mxu0 %v5356_v0 }
 0x4cb   : > { %4794 = vmatmul.mubr.msk.f32.vlgmr.msra.gmra.mxu1 %vm1227_vm2, %v2591_v52  ;;  %4799 = vmatpush3.msra.mxu0 %v2942_v61 }
 0x4cc   : > { %v4775_v53 = vpop.f32.mrf.mxu1  ;;  %4809 = vmatprep.mubr.msk.f32.mxu1 %vm5357_vm0, %v5356_v0  ;;  %4800 = vmatprep.subr.mxu0 %v5356_v0 }
 0x4cd   : > { %4801 = vmatpush3.msra.mxu0 %v2941_v18 }
 0x4ce   : > { %4802 = vmatprep.subr.mxu0 %v5356_v0 }
 0x4cf   : > { %4803 = vmatpush3.msra.mxu0 %v2940_v19 }
 0x4d0   : > { %4817 = vmatprep.subr.mxu0 %v5356_v0 }
 0x582   : > { %v2664_v54 = vpop.f32.mrf.mxu0 }
 0x583   : > { %v2887_v57 = vsel %vm927_vm1, %v2664_v54, 0.0 }
 0x584   : > { %v4780_v55 = vpop.f32.mrf.mxu0 }
 0x586   : > { %v2737_v56 = vpop.f32.mrf.mxu1 }
 0x587   : > { %v2888_v58 = vsel %vm927_vm1, %v2737_v56, 0.0  ;;  %v2810_v59 = vpop.f32.mrf.mxu0 }
 0x588   : > { %v2889_v60 = vadd.f32 %v2888_v58, %v2887_v57  ;;  %v4785_v62 = vpop.f32.mrf.mxu1  ;;  %v2890_v63 = vsel %vm927_vm1, %v2810_v59, 0.0  ;;  %v4586_v58 = vld [vmem:[%s6259_s19] ss:$0 sm:$0xff] }
 0x589   : > { %v4790_v1 = vpop.f32.mrf.mxu0 }
 0x58a   : > { %v2891_v2 = vadd.f32 %v2890_v63, %v2889_v60 }
 0x58b   : > { %v2883_v3 = vpop.f32.mrf.mxu1 }
 0x58c   : > { %v2892_v6 = vsel %vm927_vm1, %v2883_v3, 0.0 }
 0x58d   : > { %v2893_v7 = vadd.f32 %v2892_v6, %v2891_v2  ;;  %v4795_v8 = vpop.f32.mrf.mxu1  ;;  %v4587_v2 = vld [vmem:[%s6260_s20] ss:$0 sm:$0xff] }
 0x58f   : > { %v2900_v9 = vadd.f32 %v4585_v4, %v2893_v7 }
 0x591   : > { %v2901_v10 = vadd.f32 %v2900_v9, %v5714_v5 }
 0x593   : > { %v2904_v11 = vsel %vm927_vm1, %v2901_v10, 0.0 }
 0x594   : > { %2905 = vadd.xlane.f32.xlu1 %v2904_v11 }
 0x5a5   : > { %1390 = vrot.lane.b32.xlu1 %v5960_v14, %s5359_s29 }
 0x5a9   : > { %1396 = vrot.lane.b32.xlu1 %v5960_v14, %s5358_s26 }
 0x61d   : > { %v2906_v15 = vpop.xlane.xlu1 %2905 }
 0x61e   : > { %v2908_v16 = vmul.f32 0.03125, %v2906_v15 }
 0x620   : > { %v2909_v25 = vsub.f32 %v2901_v10, %v2908_v16 }
 0x621   : > { %v5973_v20 = vpop.permute.xlu1 %1390 }
 0x622   : > { %v2910_v5 = vmul.f32 %v2909_v25, %v2909_v25 }
 0x624   : > { %v2911_v29 = vsel %vm927_vm1, %v2910_v5, 0.0 }
 0x625   : > { %2912 = vadd.xlane.f32.xlu0 %v2911_v29  ;;  %v5975_v21 = vpop.permute.xlu1 %1396 }
 0x626   : > { %v1415_v24 = vcombine.low %v5973_v20, %v5975_v21  ;;  %v1416_v26 = vcombine.high %v5973_v20, %v5975_v21 }
 0x628   : > { %v1423_v35 = vrot.slane %v1415_v24, %v5781_v33  ;;  %v1430_v31 = vrot.slane %v1416_v26, %v5781_v33 }
 0x63b   : > { %1393 = vrot.lane.b32.xlu0 %v5960_v14, %s5360_s8 }
 0x6ae   : > { %v2913_v22 = vpop.xlane.xlu0 %2912 }
 0x6af   : > { %v2914_v23 = vmul.f32 0.03125, %v2913_v22 }
 0x6b1   : > { %v2915_v27 = vadd.f32 1e-05, %v2914_v23 }
 0x6b2   : > { %v5981_v28 = vpop.permute.xlu0 %1393 }
 0x6b3   : > { %5041 = vrsqrt.f32 %v2915_v27  ;;  %v1399_v32 = vcombine.low %v5960_v14, %v5981_v28  ;;  %v1400_v34 = vcombine.high %v5960_v14, %v5981_v28 }
 0x6b5   : > { %v1407_v37 = vrot.slane %v1399_v32, %v5781_v33  ;;  %v1414_v36 = vrot.slane %v1400_v34, %v5781_v33 }
 0x6b7   : > { %v1431_v38 = vcombine.low %v1407_v37, %v1423_v35  ;;  %v1432_v12 = vcombine.high %v1407_v37, %v1423_v35  ;;  %v1447_v40 = vcombine.low %v1414_v36, %v1430_v31  ;;  %v1448_v30 = vcombine.high %v1414_v36, %v1430_v31 }
 0x6b9   : > { %v1439_v41 = vrot.slane %v1431_v38, %v5794_v39  ;;  %v1446_v42 = vrot.slane %v1432_v12, %v5794_v39  ;;  %v1455_v43 = vrot.slane %v1447_v40, %v5794_v39  ;;  %v1462_v44 = vrot.slane %v1448_v30, %v5794_v39 }
 0x6bb   : > { %v1547_v45 = vcombine.low %v1439_v41, %v1446_v42  ;;  %v4561_v46 = vcombine.high %v1439_v41, %v1446_v42  ;;  %v1563_v47 = vcombine.low %v1455_v43, %v1462_v44  ;;  %v4562_v48 = vcombine.high %v1455_v43, %v1462_v44 }
 0x6bd   : > { %v1554_v49 = vrot.slane %v1547_v45, %v5781_v33  ;;  %v1562_v50 = vrot.slane %v4561_v46, %v5781_v33  ;;  %v1570_v51 = vrot.slane %v1563_v47, %v5781_v33  ;;  %v1578_v52 = vrot.slane %v4562_v48, %v5781_v33 }
 0x6bf   : > { %v1579_v53 = vcombine.low %v1554_v49, %v1562_v50  ;;  %v1580_v54 = vcombine.high %v1554_v49, %v1562_v50  ;;  %v1595_v55 = vcombine.low %v1570_v51, %v1578_v52  ;;  %v1596_v56 = vcombine.high %v1570_v51, %v1578_v52 }
 0x6c0   : > { %v5042_v57 = vpop.eup %5041 }
 0x6c1   : > { %v2917_v59 = vmul.f32 %v5042_v57, %v2909_v25  ;;  %v1587_v60 = vrot.slane %v1579_v53, %v5794_v39  ;;  %v1594_v62 = vrot.slane %v1580_v54, %v5794_v39  ;;  %v1603_v63 = vrot.slane %v1595_v55, %v5794_v39 }
 0x6c2   : > { %v1610_v1 = vrot.slane %v1596_v56, %v5794_v39 }
 0x6c3   : > { %v1611_v3 = vcombine.low %v1587_v60, %v1603_v63  ;;  %v1612_v4 = vcombine.high %v1587_v60, %v1603_v63  ;;  %v2924_v6 = vmul.f32 %v4586_v58, %v2917_v59 }
 0x6c4   : > { %v1613_v7 = vcombine.low %v1594_v62, %v1610_v1  ;;  %v1614_v8 = vcombine.high %v1594_v62, %v1610_v1  ;;  %v1701_v1 = vld [vmem:[#allocation11] sm:$0xff] }
 0x6c5   : > { %1615 = vst.msk [vmem:[#allocation4] sm:$0xff] %vm1227_vm2, %v1611_v3  ;;  %1616 = vst.msk [vmem:[#allocation4 + $0x8] sm:$0xff] %vm1227_vm2, %v1612_v4  ;;  %v6011_v9 = vadd.f32 %v4587_v2, %v2924_v6 }
 0x6c6   : > { %1617 = vst.msk [vmem:[#allocation4 + $0x10] sm:$0xff] %vm1227_vm2, %v1613_v7  ;;  %1618 = vst.msk [vmem:[#allocation4 + $0x18] sm:$0xff] %vm1227_vm2, %v1614_v8 }
 0x6c7   : > { %4805 = vmatmul.mubr.msk.f32.vlgmr.msra.gmra.mxu0 %vm927_vm1, %v6011_v9 }
 0x6c8   : > { %4819 = vmatprep.mubr.msk.f32.mxu0 %vm5357_vm0, %v5356_v0 }
 0x6cc   : > { %v2932_v10 = vld [vmem:[#allocation4] sm:$0xff]  ;;  %v2933_v57 = vld [vmem:[#allocation4 + $0x8] sm:$0xff] }
 0x6cd   : > { %4808 = vmatpush3.xpose.msk.msra.mxu1 %vm1227_vm2, %v2932_v10  ;;  %v2934_v11 = vld [vmem:[#allocation4 + $0x10] sm:$0xff]  ;;  %v2935_v59 = vld [vmem:[#allocation4 + $0x18] sm:$0xff] }
 0x6ce   : > { %4818 = vmatpush3.xpose.msk.msra.mxu0 %vm1227_vm2, %v2934_v11  ;;  %4812 = vmatprep.subr.mxu1 %v5356_v0 }
 0x6cf   : > { %4827 = vmatprep.subr.mxu0 %v5356_v0 }
 0x787   : > { %v3025_v15 = vpop.f32.mrf.mxu0 }
 0x788   : > { %v3026_v16 = vadd.f32 %v4588_v13, %v3025_v15 }
 0x789   : > { %v4806_v25 = vpop.f32.mrf.mxu0 }
 0x78a   : > { %3033 = vrot.lane.b32.xlu0 %v3026_v16, %s5360_s8  ;;  %3030 = vrot.lane.b32.xlu1 %v3026_v16, %s5359_s29  ;;  %s6334_s29 = sld [smem:[#allocation47_spill]] }
 0x78e   : > { %3036 = vrot.lane.b32.xlu1 %v3026_v16, %s5358_s26  ;;  %s5364_s26 = smov [#allocation18]  }
 0x7fc   : > { %v3034_v5 = vpop.permute.xlu0 %3033  ;;  %v3031_v29 = vpop.permute.xlu1 %3030 }
 0x7fd   : > { %v3039_v17 = vcombine.low %v3026_v16, %v3034_v5  ;;  %v3040_v61 = vcombine.high %v3026_v16, %v3034_v5 }
 0x7ff   : > { %v3047_v23 = vrot.slane %v3039_v17, %v5781_v33  ;;  %v3054_v24 = vrot.slane %v3040_v61, %v5781_v33 }
 0x800   : > { %v3037_v18 = vpop.permute.xlu1 %3036 }
 0x801   : > { %v3055_v19 = vcombine.low %v3031_v29, %v3037_v18  ;;  %v3056_v22 = vcombine.high %v3031_v29, %v3037_v18 }
 0x803   : > { %v3063_v26 = vrot.slane %v3055_v19, %v5781_v33  ;;  %v3070_v27 = vrot.slane %v3056_v22, %v5781_v33 }
 0x805   : > { %v3071_v32 = vcombine.low %v3047_v23, %v3063_v26  ;;  %v3072_v34 = vcombine.high %v3047_v23, %v3063_v26  ;;  %v3087_v35 = vcombine.low %v3054_v24, %v3070_v27  ;;  %v3088_v31 = vcombine.high %v3054_v24, %v3070_v27 }
 0x807   : > { %v3079_v37 = vrot.slane %v3071_v32, %v5794_v39  ;;  %v3086_v36 = vrot.slane %v3072_v34, %v5794_v39  ;;  %v3095_v38 = vrot.slane %v3087_v35, %v5794_v39  ;;  %v3102_v12 = vrot.slane %v3088_v31, %v5794_v39 }
 0x809   : > { %v3107_v40 = vcombine.low %v3079_v37, %v3086_v36  ;;  %v4590_v30 = vcombine.high %v3079_v37, %v3086_v36  ;;  %v3123_v41 = vcombine.low %v3095_v38, %v3102_v12  ;;  %v4591_v42 = vcombine.high %v3095_v38, %v3102_v12 }
 0x80b   : > { %v3114_v43 = vrot.slane %v3107_v40, %v5781_v33  ;;  %v3122_v44 = vrot.slane %v4590_v30, %v5781_v33  ;;  %v3130_v45 = vrot.slane %v3123_v41, %v5781_v33  ;;  %v3138_v46 = vrot.slane %v4591_v42, %v5781_v33 }
 0x80d   : > { %v3139_v47 = vcombine.low %v3114_v43, %v3122_v44  ;;  %v3140_v48 = vcombine.high %v3114_v43, %v3122_v44  ;;  %v3155_v49 = vcombine.low %v3130_v45, %v3138_v46  ;;  %v3156_v50 = vcombine.high %v3130_v45, %v3138_v46 }
 0x80f   : > { %v3147_v51 = vrot.slane %v3139_v47, %v5794_v39  ;;  %v3163_v52 = vrot.slane %v3155_v49, %v5794_v39  ;;  %v3154_v53 = vrot.slane %v3140_v48, %v5794_v39  ;;  %v3170_v54 = vrot.slane %v3156_v50, %v5794_v39 }
 0x811   : > { %v3171_v55 = vcombine.low %v3147_v51, %v3163_v52  ;;  %v3173_v56 = vcombine.low %v3154_v53, %v3170_v54  ;;  %v3172_v58 = vcombine.high %v3147_v51, %v3163_v52  ;;  %v3174_v60 = vcombine.high %v3154_v53, %v3170_v54 }
 0x813   : > { %4810 = vmatmul.mubr.msk.f32.vlgmr.msra.gmra.mxu1 %vm1227_vm2, %v3171_v55  ;;  %4820 = vmatmul.mubr.msk.f32.vlgmr.msra.gmra.mxu0 %vm1227_vm2, %v3173_v56 }
 0x814   : > { %4813 = vmatpush3.xpose.msk.msra.mxu1 %vm1227_vm2, %v2933_v57  ;;  %4814 = vmatprep.mubr.msk.f32.mxu1 %vm5357_vm0, %v5356_v0 }
 0x815   : > { %4822 = vmatprep.subr.mxu1 %v5356_v0  ;;  %4829 = vmatprep.mubr.msk.f32.mxu0 %vm5357_vm0, %v5356_v0 }
 0x817   : > { %4815 = vmatmul.mubr.msk.f32.vlgmr.msra.gmra.mxu1 %vm1227_vm2, %v3172_v58 }
 0x818   : > { %4823 = vmatpush3.xpose.msk.msra.mxu1 %vm1227_vm2, %v2935_v59  ;;  %4824 = vmatprep.mubr.msk.f32.mxu1 %vm5357_vm0, %v5356_v0 }
 0x819   : > { %4832 = vmatprep.subr.mxu1 %v5356_v0 }
 0x81b   : > { %4825 = vmatmul.mubr.msk.f32.vlgmr.msra.gmra.mxu1 %vm1227_vm2, %v3174_v60 }
 0x81c   : > { %4834 = vmatprep.mubr.msk.f32.mxu1 %vm5357_vm0, %v5356_v0 }
 0x8d3   : > { %v3247_v62 = vpop.f32.mrf.mxu1  ;;  %v3399_v63 = vpop.f32.mrf.mxu0 }
 0x8d4   : > { %v3479_v2 = vmul.f32 0.35355338, %v3247_v62  ;;  %v3481_v3 = vmul.f32 0.35355338, %v3399_v63 }
 0x8d5   : > { %v4811_v4 = vpop.f32.mrf.mxu1  ;;  %v4821_v6 = vpop.f32.mrf.mxu0 }
 0x8d6   : > { %v3483_v7 = vadd.f32 %v3479_v2, %v1701_v1  ;;  %v3485_v13 = vadd.f32 %v3481_v3, %v1701_v1 }
 0x8d7   : > { %v3323_v8 = vpop.f32.mrf.mxu1 }
 0x8d8   : > { %v3480_v10 = vmul.f32 0.35355338, %v3323_v8  ;;  %v3487_v11 = vsel %vm1227_vm2, %v3483_v7, -inf  ;;  %v3493_v17 = vsel %vm1227_vm2, %v3485_v13, -inf }
 0x8d9   : > { %3488 = vmax.xlane.f32.xlu0 %v3487_v11  ;;  %v4816_v15 = vpop.f32.mrf.mxu1 }
 0x8da   : > { %v3484_v16 = vadd.f32 %v3480_v10, %v1701_v1 }
 0x8db   : > { %v3475_v25 = vpop.f32.mrf.mxu1 }
 0x8dc   : > { %v3482_v5 = vmul.f32 0.35355338, %v3475_v25  ;;  %v3490_v29 = vsel %vm1227_vm2, %v3484_v16, -inf }
 0x8dd   : > { %3491 = vmax.xlane.f32.xlu1 %v3490_v29  ;;  %v4826_v61 = vpop.f32.mrf.mxu1  ;;  %3494 = vmax.xlane.f32.xlu0 %v3493_v17 }
 0x8de   : > { %v3486_v18 = vadd.f32 %v3482_v5, %v1701_v1 }
 0x8e0   : > { %v3496_v19 = vsel %vm1227_vm2, %v3486_v18, -inf }
 0x8e1   : > { %3497 = vmax.xlane.f32.xlu0 %v3496_v19 }
 0x8ee   : > { %1469 = vrot.lane.b32.xlu1 %v5973_v20, %s5363_s9 }
 0x8f2   : > { %1471 = vrot.lane.b32.xlu1 %v5981_v28, %s5363_s9 }
 0x8f7   : > { %1467 = vrot.lane.b32.xlu0 %v5960_v14, %s5363_s9 }
 0x8fb   : > { %1473 = vrot.lane.b32.xlu0 %v5975_v21, %s5363_s9 }
 0x962   : > { %v3489_v22 = vpop.xlane.xlu0 %3488 }
 0x963   : > { %v3499_v23 = vsub.f32 %v3483_v7, %v3489_v22 }
 0x965   : > { %v3503_v24 = vmul.f32 1.442695, %v3499_v23 }
 0x966   : > { %v3492_v26 = vpop.xlane.xlu1 %3491  ;;  %v3495_v27 = vpop.xlane.xlu0 %3494 }
 0x967   : > { %5043 = vpow2.f32 %v3503_v24  ;;  %v3500_v32 = vsub.f32 %v3484_v16, %v3492_v26  ;;  %v3501_v34 = vsub.f32 %v3485_v13, %v3495_v27 }
 0x969   : > { %v3505_v35 = vmul.f32 1.442695, %v3500_v32  ;;  %v3507_v31 = vmul.f32 1.442695, %v3501_v34 }
 0x96a   : > { %v1470_v20 = vpop.permute.xlu1 %1469  ;;  %v3498_v37 = vpop.xlane.xlu0 %3497 }
 0x96b   : > { %5045 = vpow2.f32 %v3505_v35  ;;  %v3502_v28 = vsub.f32 %v3486_v18, %v3498_v37 }
 0x96c   : > { %5047 = vpow2.f32 %v3507_v31 }
 0x96d   : > { %v3509_v36 = vmul.f32 1.442695, %v3502_v28 }
 0x96e   : > { %v1472_v14 = vpop.permute.xlu1 %1471  ;;  %v1468_v38 = vpop.permute.xlu0 %1467 }
 0x96f   : > { %5049 = vpow2.f32 %v3509_v36  ;;  %v1479_v21 = vcombine.low %v1468_v38, %v1472_v14  ;;  %v1480_v12 = vcombine.high %v1468_v38, %v1472_v14  ;;  %v2945_v38 = vld [vmem:[#allocation15] sm:$0xff] }
 0x971   : > { %v1487_v43 = vrot.slane %v1479_v21, %v5781_v33  ;;  %v1494_v44 = vrot.slane %v1480_v12, %v5781_v33  ;;  %v2946_v21 = vld [vmem:[#allocation15 + $0x8] sm:$0xff]  ;;  %v2947_v12 = vld [vmem:[#allocation15 + $0x10] sm:$0xff] }
 0x972   : > { %v1474_v40 = vpop.permute.xlu0 %1473 }
 0x973   : > { %v1495_v30 = vcombine.low %v1470_v20, %v1474_v40  ;;  %v1496_v41 = vcombine.high %v1470_v20, %v1474_v40 }
 0x974   : > { %v6073_v42 = vpop.eup %5043 }
 0x975   : > { %v1503_v45 = vrot.slane %v1495_v30, %v5781_v33  ;;  %v1510_v46 = vrot.slane %v1496_v41, %v5781_v33  ;;  %v3511_v47 = vsel %vm1227_vm2, %v6073_v42, 0.0  ;;  %v2948_v41 = vld [vmem:[#allocation15 + $0x18] sm:$0xff] }
 0x976   : > { %3512 = vadd.xlane.f32.xlu1 %v3511_v47 }
 0x977   : > { %v1511_v48 = vcombine.low %v1487_v43, %v1503_v45  ;;  %v1512_v49 = vcombine.high %v1487_v43, %v1503_v45  ;;  %v1527_v50 = vcombine.low %v1494_v44, %v1510_v46  ;;  %v1528_v51 = vcombine.high %v1494_v44, %v1510_v46 }
 0x978   : > { %v5046_v52 = vpop.eup %5045 }
 0x979   : > { %v5048_v53 = vpop.eup %5047  ;;  %v1519_v54 = vrot.slane %v1511_v48, %v5794_v39  ;;  %v1526_v55 = vrot.slane %v1512_v49, %v5794_v39  ;;  %v1535_v56 = vrot.slane %v1527_v50, %v5794_v39  ;;  %v1542_v57 = vrot.slane %v1528_v51, %v5794_v39 }
 0x97a   : > { %v3514_v58 = vsel %vm1227_vm2, %v5046_v52, 0.0  ;;  %v3517_v59 = vsel %vm1227_vm2, %v5048_v53, 0.0 }
 0x97b   : > { %v1619_v60 = vcombine.low %v1519_v54, %v1526_v55  ;;  %v4563_v62 = vcombine.high %v1519_v54, %v1526_v55  ;;  %v1635_v63 = vcombine.low %v1535_v56, %v1542_v57  ;;  %v4564_v1 = vcombine.high %v1535_v56, %v1542_v57  ;;  %3515 = vadd.xlane.f32.xlu1 %v3514_v58 }
 0x97c   : > { %v5050_v2 = vpop.eup %5049  ;;  %3518 = vadd.xlane.f32.xlu0 %v3517_v59 }
 0x97d   : > { %v1626_v3 = vrot.slane %v1619_v60, %v5781_v33  ;;  %v1634_v4 = vrot.slane %v4563_v62, %v5781_v33  ;;  %v1642_v6 = vrot.slane %v1635_v63, %v5781_v33  ;;  %v1650_v7 = vrot.slane %v4564_v1, %v5781_v33  ;;  %v4608_v60 = vld [vmem:[%s6254_s14] ss:$0 sm:$0xff] }
 0x97e   : > { %v3520_v8 = vsel %vm1227_vm2, %v5050_v2, 0.0 }
 0x97f   : > { %v1651_v10 = vcombine.low %v1626_v3, %v1634_v4  ;;  %v1652_v11 = vcombine.high %v1626_v3, %v1634_v4  ;;  %v1667_v13 = vcombine.low %v1642_v6, %v1650_v7  ;;  %v1668_v15 = vcombine.high %v1642_v6, %v1650_v7 }
 0x980   : > { %3521 = vadd.xlane.f32.xlu0 %v3520_v8 }
 0x981   : > { %v1659_v16 = vrot.slane %v1651_v10, %v5794_v39  ;;  %v1666_v25 = vrot.slane %v1652_v11, %v5794_v39  ;;  %v1675_v5 = vrot.slane %v1667_v13, %v5794_v39  ;;  %v1682_v29 = vrot.slane %v1668_v15, %v5794_v39  ;;  %v4162_v13 = vld [vmem:[#allocation17 + $0x18] sm:$0xff]  ;;  %v4161_v15 = vld [vmem:[#allocation17 + $0x10] sm:$0xff] }
 0x983   : > { %v1683_v17 = vcombine.low %v1659_v16, %v1675_v5  ;;  %v1684_v61 = vcombine.high %v1659_v16, %v1675_v5  ;;  %v1685_v18 = vcombine.low %v1666_v25, %v1682_v29  ;;  %v1686_v19 = vcombine.high %v1666_v25, %v1682_v29  ;;  %v4160_v16 = vld [vmem:[#allocation17 + $0x8] sm:$0xff]  ;;  %v4251_v25 = vld [vmem:[%s6257_s17 + $0x38] sm:$0xff]  ;;  %v4249_v29 = vld [vmem:[%s6257_s17 + $0x28] sm:$0xff] }
 0x984   : > { %v4250_v5 = vld [vmem:[%s6257_s17 + $0x30] sm:$0xff] }
 0x985   : > { %1687 = vst.msk [vmem:[#allocation5] sm:$0xff] %vm1227_vm2, %v1683_v17  ;;  %1688 = vst.msk [vmem:[#allocation5 + $0x8] sm:$0xff] %vm1227_vm2, %v1684_v61  ;;  %v4248_v17 = vld [vmem:[%s6257_s17 + $0x20] sm:$0xff]  ;;  %v4247_v61 = vld [vmem:[%s6257_s17 + $0x18] sm:$0xff] }
 0x986   : > { %1689 = vst.msk [vmem:[#allocation5 + $0x10] sm:$0xff] %vm1227_vm2, %v1685_v18  ;;  %1690 = vst.msk [vmem:[#allocation5 + $0x18] sm:$0xff] %vm1227_vm2, %v1686_v19 }
 0x98c   : > { %v2936_v33 = vld [vmem:[#allocation5] sm:$0xff]  ;;  %v2937_v22 = vld [vmem:[#allocation5 + $0x8] sm:$0xff] }
 0x98d   : > { %4828 = vmatpush3.msra.mxu0 %v2936_v33  ;;  %4833 = vmatpush3.msra.mxu1 %v2937_v22  ;;  %v2938_v34 = vld [vmem:[#allocation5 + $0x10] sm:$0xff]  ;;  %v2939_v28 = vld [vmem:[#allocation5 + $0x18] sm:$0xff] }
 0x98e   : > { %4837 = vmatprep.subr.mxu0 %v5356_v0  ;;  %4842 = vmatprep.subr.mxu1 %v5356_v0 }
 0x9ff   : > { %v3513_v39 = vpop.xlane.xlu1 %3512 }
 0xa00   : > { %5051 = vrcp.f32 %v3513_v39  ;;  %v4609_v39 = vld [vmem:[%s6261_s21] ss:$0 sm:$0xff] }
 0xa04   : > { %v3516_v23 = vpop.xlane.xlu1 %3515 }
 0xa05   : > { %5053 = vrcp.f32 %v3516_v23  ;;  %v3519_v24 = vpop.xlane.xlu0 %3518 }
 0xa06   : > { %5055 = vrcp.f32 %v3519_v24  ;;  %v4610_v24 = vld [vmem:[%s6262_s22] ss:$0 sm:$0xff] }
 0xa09   : > { %v3522_v26 = vpop.xlane.xlu0 %3521 }
 0xa0a   : > { %5057 = vrcp.f32 %v3522_v26 }
 0xa0d   : > { %v5052_v27 = vpop.eup %5051 }
 0xa0e   : > { %v3527_v32 = vmul.f32 %v5052_v27, %v6073_v42 }
 0xa10   : > { %4830 = vmatmul.mubr.msk.f32.vlgmr.msra.gmra.mxu0 %vm1227_vm2, %v3527_v32  ;;  %v4246_v32 = vld [vmem:[%s6257_s17 + $0x10] sm:$0xff] }
 0xa11   : > { %4838 = vmatpush3.msra.mxu0 %v2938_v34  ;;  %4839 = vmatprep.mubr.msk.f32.mxu0 %vm5357_vm0, %v5356_v0  ;;  %v4245_v34 = vld [vmem:[%s6257_s17 + $0x8] sm:$0xff] }
 0xa12   : > { %v5054_v35 = vpop.eup %5053  ;;  %4847 = vmatprep.subr.mxu0 %v5356_v0 }
 0xa13   : > { %v5056_v31 = vpop.eup %5055  ;;  %v3528_v20 = vmul.f32 %v5054_v35, %v5046_v52  ;;  %v4244_v35 = vld [vmem:[%s6257_s17] sm:$0xff] }
 0xa14   : > { %v3529_v37 = vmul.f32 %v5056_v31, %v5048_v53  ;;  %v4611_v31 = vld [vmem:[%s6331_s6] ss:$0 sm:$0xff] }
 0xa15   : > { %4835 = vmatmul.mubr.msk.f32.vlgmr.msra.gmra.mxu1 %vm1227_vm2, %v3528_v20 }
 0xa16   : > { %4840 = vmatmul.mubr.msk.f32.vlgmr.msra.gmra.mxu0 %vm1227_vm2, %v3529_v37  ;;  %4843 = vmatpush3.msra.mxu1 %v2939_v28 }
 0xa17   : > { %v5058_v36 = vpop.eup %5057  ;;  %4844 = vmatprep.mubr.msk.f32.mxu1 %vm5357_vm0, %v5356_v0  ;;  %4849 = vmatprep.mubr.msk.f32.mxu0 %vm5357_vm0, %v5356_v0 }
 0xa18   : > { %v3530_v14 = vmul.f32 %v5058_v36, %v5050_v2  ;;  %4852 = vmatprep.subr.mxu1 %v5356_v0  ;;  %4848 = vmatpush3.msra.mxu0 %v2945_v38 }
 0xa19   : > { %4857 = vmatprep.subr.mxu0 %v5356_v0 }
 0xa1a   : > { %4845 = vmatmul.mubr.msk.f32.vlgmr.msra.gmra.mxu1 %vm1227_vm2, %v3530_v14  ;;  %v4613_v14 = vld [vmem:[%s6332_s25] ss:$0 sm:$0xff]  ;;  %s4365_s25 = scalar_lea.sflag [#allocation8], %s5665_s15 }
 0xa1b   : > { %4854 = vmatprep.mubr.msk.f32.mxu1 %vm5357_vm0, %v5356_v0  ;;  %4853 = vmatpush3.msra.mxu1 %v2946_v21 }
 0xa1c   : > { %4862 = vmatprep.subr.mxu1 %v5356_v0 }
 0xad0   : > { %v3600_v40 = vpop.f32.mrf.mxu0 }
 0xad1   : > { %4850 = vmatmul.mubr.msk.f32.vlgmr.msra.gmra.mxu0 %vm1227_vm2, %v3600_v40 }
 0xad2   : > { %v4831_v30 = vpop.f32.mrf.mxu0  ;;  %4858 = vmatpush3.msra.mxu0 %v2947_v12  ;;  %4859 = vmatprep.mubr.msk.f32.mxu0 %vm5357_vm0, %v5356_v0 }
 0xad3   : > { %4867 = vmatprep.subr.mxu0 %v5356_v0 }
 0xad5   : > { %v3673_v42 = vpop.f32.mrf.mxu1 }
 0xad6   : > { %v3746_v43 = vpop.f32.mrf.mxu0  ;;  %4855 = vmatmul.mubr.msk.f32.vlgmr.msra.gmra.mxu1 %vm1227_vm2, %v3673_v42 }
 0xad7   : > { %4860 = vmatmul.mubr.msk.f32.vlgmr.msra.gmra.mxu0 %vm1227_vm2, %v3746_v43  ;;  %v4836_v44 = vpop.f32.mrf.mxu1  ;;  %4863 = vmatpush3.msra.mxu1 %v2948_v41 }
 0xad8   : > { %v4841_v45 = vpop.f32.mrf.mxu0  ;;  %4864 = vmatprep.mubr.msk.f32.mxu1 %vm5357_vm0, %v5356_v0  ;;  %4875 = vmatprep.mubr.msk.f32.mxu0 %vm5357_vm0, %v5356_v0 }
 0xad9   : > { %4878 = vmatprep.subr.mxu1 %v5356_v0  ;;  %4868 = vmatpush3.msra.mxu0 %v4162_v13 }
 0xada   : > { %v3819_v46 = vpop.f32.mrf.mxu1  ;;  %4869 = vmatprep.subr.mxu0 %v5356_v0 }
 0xadb   : > { %4865 = vmatmul.mubr.msk.f32.vlgmr.msra.gmra.mxu1 %vm1227_vm2, %v3819_v46  ;;  %4870 = vmatpush3.msra.mxu0 %v4161_v15 }
 0xadc   : > { %v4846_v47 = vpop.f32.mrf.mxu1  ;;  %4894 = vmatprep.mubr.msk.f32.mxu1 %vm5357_vm0, %v5356_v0  ;;  %4871 = vmatprep.subr.mxu0 %v5356_v0 }
 0xadd   : > { %4872 = vmatpush3.msra.mxu0 %v4160_v16  ;;  %4879 = vmatpush3.msra.mxu1 %v4251_v25 }
 0xade   : > { %4873 = vmatprep.subr.mxu0 %v5356_v0  ;;  %4880 = vmatprep.subr.mxu1 %v5356_v0 }
 0xadf   : > { %4881 = vmatpush3.msra.mxu1 %v4250_v5 }
 0xae0   : > { %4882 = vmatprep.subr.mxu1 %v5356_v0 }
 0xae1   : > { %4883 = vmatpush3.msra.mxu1 %v4249_v29 }
 0xae2   : > { %4884 = vmatprep.subr.mxu1 %v5356_v0 }
 0xae3   : > { %4885 = vmatpush3.msra.mxu1 %v4248_v17 }
 0xae4   : > { %4886 = vmatprep.subr.mxu1 %v5356_v0 }
 0xae5   : > { %4887 = vmatpush3.msra.mxu1 %v4247_v61 }
 0xae6   : > { %4888 = vmatprep.subr.mxu1 %v5356_v0 }
 0xae7   : > { %4889 = vmatpush3.msra.mxu1 %v4246_v32 }
 0xae8   : > { %4890 = vmatprep.subr.mxu1 %v5356_v0 }
 0xae9   : > { %4891 = vmatpush3.msra.mxu1 %v4245_v34 }
 0xaea   : > { %4892 = vmatprep.subr.mxu1 %v5356_v0 }
 0xaeb   : > { %4893 = vmatpush3.msra.mxu1 %v4244_v35 }
 0xb91   : > { %v3892_v48 = vpop.f32.mrf.mxu0 }
 0xb92   : > { %v4115_v51 = vsel %vm927_vm1, %v3892_v48, 0.0 }
 0xb93   : > { %v4851_v49 = vpop.f32.mrf.mxu0 }
 0xb94   : > { %v4615_v49 = vld [vmem:[%s6334_s29] ss:$0 sm:$0xff]  ;;  %s5253_s29 = sshll.u32 %s5364_s26, 4  ;;  %s5254_s29 = int_to_ptr.vmem [resolvable:$false] %s5253_s29 }
 0xb95   : > { %s5255_s7 = scalar_lea.vmem %s5254_s29, 256  ;;  %p5256_p10 = scmp.lt.s32.totalorder %s4380_s11, %s5254_s29 }
 0xb96   : > { %v3965_v50 = vpop.f32.mrf.mxu1  ;;  %p5257_p11 = scmp.lt.s32.totalorder %s5255_s7, %s5249_s23 }
 0xb97   : > { %v4116_v52 = vsel %vm927_vm1, %v3965_v50, 0.0  ;;  %v4038_v53 = vpop.f32.mrf.mxu0 }
 0xb98   : > { %v4117_v54 = vadd.f32 %v4116_v52, %v4115_v51  ;;  %v4856_v55 = vpop.f32.mrf.mxu1  ;;  %v4118_v56 = vsel %vm927_vm1, %v4038_v53, 0.0  ;;  %v4616_v51 = vld [vmem:[%s6335_s27] ss:$0 sm:$0xff]  ;;  %p5258_p1 = por %p5257_p11, %p5256_p10 }
 0xb99   : > { %v4861_v57 = vpop.f32.mrf.mxu0 }
 0xb9a   : > { %v4119_v58 = vadd.f32 %v4118_v56, %v4117_v54  ;;  %p5259_p2 = pnand %p5258_p1, %p5252_p9 }
 0xb9b   : > { %v4111_v59 = vpop.f32.mrf.mxu1 }
 0xb9c   : > { %v4120_v62 = vsel %vm927_vm1, %v4111_v59, 0.0 }
 0xb9d   : > { %v4121_v63 = vadd.f32 %v4120_v62, %v4119_v58  ;;  %v4866_v1 = vpop.f32.mrf.mxu1 }
 0xb9f   : > { %v4128_v2 = vadd.f32 %v4608_v60, %v4121_v63 }
 0xba1   : > { %v4129_v3 = vadd.f32 %v4128_v2, %v6011_v9  ;;  %v4159_v9 = vld [vmem:[#allocation17] sm:$0xff] }
 0xba2   : > { %4874 = vmatpush3.msra.mxu0 %v4159_v9 }
 0xba3   : > { %v4132_v4 = vsel %vm927_vm1, %v4129_v3, 0.0 }
 0xba4   : > { %4133 = vadd.xlane.f32.xlu1 %v4132_v4 }
 0xc2d   : > { %v4134_v6 = vpop.xlane.xlu1 %4133 }
 0xc2e   : > { %v4135_v7 = vmul.f32 0.03125, %v4134_v6 }
 0xc30   : > { %v4136_v8 = vsub.f32 %v4129_v3, %v4135_v7 }
 0xc32   : > { %v4137_v10 = vmul.f32 %v4136_v8, %v4136_v8 }
 0xc34   : > { %v4138_v11 = vsel %vm927_vm1, %v4137_v10, 0.0 }
 0xc35   : > { %4139 = vadd.xlane.f32.xlu0 %v4138_v11 }
 0xcbe   : > { %v4140_v18 = vpop.xlane.xlu0 %4139 }
 0xcbf   : > { %v4141_v19 = vmul.f32 0.03125, %v4140_v18 }
 0xcc1   : > { %v4142_v33 = vadd.f32 1e-05, %v4141_v19 }
 0xcc3   : > { %5059 = vrsqrt.f32 %v4142_v33 }
 0xcd0   : > { %v5060_v22 = vpop.eup %5059 }
 0xcd1   : > { %v4144_v23 = vmul.f32 %v5060_v22, %v4136_v8 }
 0xcd3   : > { %v4151_v26 = vmul.f32 %v4609_v39, %v4144_v23 }
 0xcd5   : > { %v4158_v27 = vadd.f32 %v4610_v24, %v4151_v26 }
 0xcd7   : > { %4876 = vmatmul.mubr.msk.f32.vlgmr.msra.gmra.mxu0 %vm927_vm1, %v4158_v27 }
 0xd97   : > { %v4239_v20 = vpop.f32.mrf.mxu0 }
 0xd98   : > { %v4240_v37 = vadd.f32 %v4611_v31, %v4239_v20 }
 0xd99   : > { %v4877_v28 = vpop.f32.mrf.mxu0 }
 0xd9a   : > { %v4243_v36 = vmax.f32 %v4240_v37, 0.0 }
 0xd9c   : > { %4895 = vmatmul.mubr.msk.f32.vlgmr.msra.gmra.mxu1 %vm4259_vm4, %v4243_v36 }
 0xe5c   : > { %v4329_v0 = vpop.f32.mrf.mxu1 }
 0xe5d   : > { %v4330_v38 = vadd.f32 %v4613_v14, %v4329_v0 }
 0xe5e   : > { %v4896_v21 = vpop.f32.mrf.mxu1 }
 0xe5f   : > { %v4333_v12 = vadd.f32 %v4330_v38, %v4158_v27 }
 0xe61   : > { %v4336_v40 = vsel %vm927_vm1, %v4333_v12, 0.0 }
 0xe62   : > { %4337 = vadd.xlane.f32.xlu1 %v4336_v40 }
 0xeeb   : > { %v4338_v30 = vpop.xlane.xlu1 %4337 }
 0xeec   : > { %v4339_v41 = vmul.f32 0.03125, %v4338_v30 }
 0xeee   : > { %v4340_v42 = vsub.f32 %v4333_v12, %v4339_v41 }
 0xef0   : > { %v4341_v43 = vmul.f32 %v4340_v42, %v4340_v42 }
 0xef2   : > { %v4342_v44 = vsel %vm927_vm1, %v4341_v43, 0.0 }
 0xef3   : > { %4343 = vadd.xlane.f32.xlu0 %v4342_v44 }
 0xf7c   : > { %v4344_v45 = vpop.xlane.xlu0 %4343 }
 0xf7d   : > { %v4345_v46 = vmul.f32 0.03125, %v4344_v45 }
 0xf7f   : > { %v4346_v47 = vadd.f32 1e-05, %v4345_v46 }
 0xf81   : > { %5061 = vrsqrt.f32 %v4346_v47 }
 0xf8e   : > { %v5062_v48 = vpop.eup %5061 }
 0xf8f   : > { %v4348_v50 = vmul.f32 %v5062_v48, %v4340_v42 }
 0xf91   : > { %v4355_v52 = vmul.f32 %v4615_v49, %v4348_v50 }
 0xf93   : > { %v4362_v53 = vadd.f32 %v4616_v51, %v4355_v52 }
 0xf95   : > { %4363 = vst.msk [vmem:[%s910_s16] sm:$0xff] %vm927_vm1, %v4362_v53 }
 0xf96   : > { %5262 = shalt.err (!%p5259_p2)
}
 0xf97   : > { %s5263_s4 = scalar_lea.hbm %s4377_s30, 128  ;;  %s5267_s9 = scalar_lea.hbm %s6336_s1, 256 }
 0xf98   : > { %p5264_p7 = scmp.ne.s32.totalorder %s4377_s30, %s5263_s4  ;;  %p5268_p13 = scmp.lt.s32.totalorder %s4377_s30, %s6336_s1 }
 0xf99   : > { %p5269_p5 = scmp.lt.s32.totalorder %s5267_s9, %s5263_s4 }
 0xf9a   : > { %p5265_p4 = pnand %p5264_p7, %p5620_p12 }
 0xf9b   : > { %p5270_p6 = por %p5269_p5, %p5268_p13 }
 0xf9c   : > { %p5266_p3 = pneg %p5265_p4 }
 0xf9e   : > { %p5271_p8 = pnand %p5270_p6, %p5266_p3 }
 0xfa0   : > { %5274 = shalt.err (!%p5271_p8)
}
 0xfa1   : > { %4921 = dma.vmem_to_hbm [thread:$0]  (%p5620_p12), %s4380_s11, 128, %s4377_s30, %s4365_s25  }
 0xfa2 PF: > { %s6337_s16 = sld [smem:[#allocation25_spill]]  ;;  %p6339_p9 = scmp.ge.s32.totalorder %s5345_s3, 2 }
 0xfa4   : > { %p4947_p10 = pnand %p6339_p9, %p5628_p0 }
 0xfa6   : > { %p4948_p11 = pneg %p4947_p10 }
 0xfa8   : > { %s4391_s6 = sand.u32 1, %s6337_s16  }
 0xfa9   : > { %s4392_s23 = scalar_lea.sflag [#allocation8], %s4391_s6 }
 0xfaa   : > { %5320 = dma.done.wait (%p4948_p11), %s4392_s23, 128  }
 0xfab   : > { %5322 = vsyncadd (%p4948_p11), %s4392_s23, 4294967168  ;;  %s46_s3 = sadd.s32 1, %s5345_s3   ;;  %s6340_s26 = sld [smem:[#allocation26_spill]] }
 0xfac   : > { %p43_p1 = scmp.ge.s32.totalorder %s46_s3, 4   ;;  %s6341_s6 = sld [smem:[#allocation30_spill]] }
 0xfad   : > { %s6342_s30 = sld [smem:[#allocation28_spill]]  ;;  %s6344_s29 = smov %s5329_s2 }
 0xfae   : > { %s6343_s7 = sld [smem:[#allocation29_spill]]  ;;  %45 = sbr.rel (!%p43_p1) target bundleno = 29 (0x1d), region = 203 }
 0xfb1   : > { %s6345_s2 = smov %s6340_s26 }
 0xfb3   :  { %4397 = vsyncpa [#allocation7], 1 }
 0xfb4   :  { %4399 = vsyncpa [#allocation7 + $0x1], 1 }
 0xfb5   :  { %4400 = vsyncpa [#allocation10], 1 }
 0xfb6   :  { %4402 = vsyncpa [#allocation10 + $0x1], 1 }
 0xfb7   :  { %4403 = vsyncpa [#allocation13], 1 }
 0xfb8   :  { %4404 = vsyncpa [#allocation16], 1 }
 0xfb9   :  { %4405 = vsyncpa [#allocation8], 1 }
 0xfba   :  { %4407 = vsyncpa [#allocation8 + $0x1], 1 }

</bundles_post_ra>
